<compile_context>
chip_gen: v5e
topology: v5e:2x2
jax: 0.10.0
libtpu: 0.0.40
codegen_flags: <defaults>
</compile_context>

<pallas_src>
import functools

import jax
import jax.numpy as jnp
from jax.experimental import pallas as pl
from jax.experimental.pallas import tpu as pltpu


def _round_up(x, m):
    return (x + m - 1) // m * m


def _relu_conv_kernel(x_ref, w_ref, o_ref, *, kh, kw, wpad, out_rows):
    """x_ref: (in_rows, Cin) f32   padded NHWC input, spatial flattened (row-major)
       w_ref: (KH*KW, Cin, Cout_pad) bf16
       o_ref: (out_rows, Cout_pad) f32"""
    acc = jnp.zeros(o_ref.shape, jnp.float32)
    for ki in range(kh):
        for kj in range(kw):
            off = ki * wpad + kj                                  # static row shift
            xt = jnp.maximum(x_ref[off:off + out_rows, :], 0.0)   # ReLU in f32 (VPU)
            xt = xt.astype(jnp.bfloat16)                          # bf16 MXU operands
            acc = acc + jnp.dot(xt, w_ref[ki * kw + kj],
                                preferred_element_type=jnp.float32)
    o_ref[...] = acc


@jax.jit
def relu_conv2d_pallas(x_nchw, weight_oihw):
    """x_nchw: (1, Cin, H, W) f32; weight_oihw: (Cout, Cin, KH, KW) f32 -> (1, Cout, H, W)."""
    n, cin, h, w = x_nchw.shape
    cout, _, kh, kw = weight_oihw.shape
    assert n == 1, "kernel written for batch=1 (matches the reference module)"

    hpad, wpad = h + kh - 1, w + kw - 1            # padded spatial extent (9, 9)
    out_rows = _round_up(h * wpad, 8)              # 63 -> 64 sublanes
    max_off = (kh - 1) * wpad + (kw - 1)           # 20
    in_rows = _round_up(out_rows + max_off, 8)     # 84 -> 88 rows
    cout_pad = _round_up(cout, 128)                # 48 -> 128 lanes

    # Cheap prep (fused under jit): NCHW -> zero-padded NHWC, spatial flattened.
    xhwc = jnp.transpose(x_nchw[0], (1, 2, 0))                      # (H, W, Cin)
    xpad = jnp.pad(xhwc, ((1, 1), (1, 1), (0, 0)))                  # (HP, WP, Cin)
    xflat = xpad.reshape(hpad * wpad, cin)                          # (81, Cin)
    xflat = jnp.pad(xflat, ((0, in_rows - hpad * wpad), (0, 0)))    # (88, Cin)

    # Weight OIHW -> (tap, Cin, Cout_pad), bf16.
    w_taps = jnp.transpose(weight_oihw, (2, 3, 1, 0)).reshape(kh * kw, cin, cout)
    w_taps = jnp.pad(w_taps, ((0, 0), (0, 0), (0, cout_pad - cout)))
    w_taps = w_taps.astype(jnp.bfloat16)

    kernel = functools.partial(_relu_conv_kernel, kh=kh, kw=kw, wpad=wpad,
                               out_rows=out_rows)

    out2d = pl.pallas_call(
        kernel,
        out_shape=jax.ShapeDtypeStruct((out_rows, cout_pad), jnp.float32),
        in_specs=[
            pl.BlockSpec(memory_space=pltpu.MemorySpace.VMEM),
            pl.BlockSpec(memory_space=pltpu.MemorySpace.VMEM),
        ],
        out_specs=pl.BlockSpec(memory_space=pltpu.MemorySpace.VMEM),
    )(xflat, w_taps)

    # Extract valid rows/lanes, back to NCHW.
    out = out2d[:h * wpad, :cout].reshape(h, wpad, cout)[:, :w, :]   # (H, W, Cout)
    return jnp.transpose(out, (2, 0, 1))[None, ...]                  # (1, Cout, H, W)


if __name__ == "__main__":
    key = jax.random.PRNGKey(0)
    kx, kw_ = jax.random.split(key)

    # Shapes implied by the module's forward: x (1, 192, 7, 7), weight (48, 192, 3, 3).
    x = jax.random.normal(kx, (1, 192, 7, 7), dtype=jnp.float32)
    weight = jax.random.normal(kw_, (48, 192, 3, 3), dtype=jnp.float32) * 0.05

    out = jax.block_until_ready(relu_conv2d_pallas(x, weight))
    assert out.shape == (1, 48, 7, 7), out.shape

    def conv_ref(xr, wt):
        return jax.lax.conv_general_dilated(
            xr, wt, window_strides=(1, 1), padding=((1, 1), (1, 1)),
            dimension_numbers=("NCHW", "OIHW", "NCHW"))

    # Tight check against a reference using the same bf16 operand quantization.
    x_q = jnp.maximum(x, 0.0).astype(jnp.bfloat16).astype(jnp.float32)
    w_q = weight.astype(jnp.bfloat16).astype(jnp.float32)
    ref_q = jax.block_until_ready(conv_ref(x_q, w_q))
    assert jnp.allclose(out, ref_q, atol=2e-3, rtol=2e-3), float(
        jnp.max(jnp.abs(out - ref_q)))

    # Loose sanity check against the pure-f32 module semantics (bf16 operand error).
    ref_f32 = jax.block_until_ready(conv_ref(jnp.maximum(x, 0.0), weight))
    assert jnp.allclose(out, ref_f32, atol=1e-1, rtol=1e-1), float(
        jnp.max(jnp.abs(out - ref_f32)))

    print("KERNEL_OK")
</pallas_src>

<mosaic_0001>
module attributes {stable_mosaic.version = 11 : i64} {
  func.func @_relu_conv_kernel(%arg0: memref<88x192xf32, #tpu.memory_space<vmem>>, %arg1: memref<9x192x128xbf16, #tpu.memory_space<vmem>>, %arg2: memref<64x128xf32, #tpu.memory_space<vmem>>) attributes {dimension_semantics = [], scalar_prefetch = 0 : i64, scratch_operands = 0 : i64, tpu.core_type = #tpu.core_type<tc>} {
    %cst = arith.constant 0.000000e+00 : f32
    %0 = vector.broadcast %cst : f32 to vector<64x128xf32>
    %c0 = arith.constant 0 : index
    %c0_0 = arith.constant 0 : index
    %1 = vector.load %arg0[%c0, %c0_0] : memref<88x192xf32, #tpu.memory_space<vmem>>, vector<64x192xf32>
    %cst_1 = arith.constant 0.000000e+00 : f32
    %2 = vector.broadcast %cst_1 : f32 to vector<64x192xf32>
    %3 = arith.maximumf %1, %2 : vector<64x192xf32>
    %4 = arith.truncf %3 : vector<64x192xf32> to vector<64x192xbf16>
    %c0_2 = arith.constant 0 : index
    %c0_3 = arith.constant 0 : index
    %c0_4 = arith.constant 0 : index
    %5 = vector.load %arg1[%c0_2, %c0_3, %c0_4] : memref<9x192x128xbf16, #tpu.memory_space<vmem>>, vector<1x192x128xbf16>
    %6 = vector.shape_cast %5 : vector<1x192x128xbf16> to vector<192x128xbf16>
    %cst_5 = arith.constant dense<0.000000e+00> : vector<64x128xf32>
    %7 = tpu.matmul %4, %6, %cst_5 {dimension_numbers = #tpu.dot_dimension_numbers<[1], [0], [0], [1], [0, 0, 1, 1], [], []>} : vector<64x192xbf16>, vector<192x128xbf16>, vector<64x128xf32> -> vector<64x128xf32>
    %8 = arith.addf %0, %7 : vector<64x128xf32>
    %c1 = arith.constant 1 : index
    %c0_6 = arith.constant 0 : index
    %9 = vector.load %arg0[%c1, %c0_6] : memref<88x192xf32, #tpu.memory_space<vmem>>, vector<64x192xf32>
    %cst_7 = arith.constant 0.000000e+00 : f32
    %10 = vector.broadcast %cst_7 : f32 to vector<64x192xf32>
    %11 = arith.maximumf %9, %10 : vector<64x192xf32>
    %12 = arith.truncf %11 : vector<64x192xf32> to vector<64x192xbf16>
    %c1_8 = arith.constant 1 : index
    %c0_9 = arith.constant 0 : index
    %c0_10 = arith.constant 0 : index
    %13 = vector.load %arg1[%c1_8, %c0_9, %c0_10] : memref<9x192x128xbf16, #tpu.memory_space<vmem>>, vector<1x192x128xbf16>
    %14 = vector.shape_cast %13 : vector<1x192x128xbf16> to vector<192x128xbf16>
    %cst_11 = arith.constant dense<0.000000e+00> : vector<64x128xf32>
    %15 = tpu.matmul %12, %14, %cst_11 {dimension_numbers = #tpu.dot_dimension_numbers<[1], [0], [0], [1], [0, 0, 1, 1], [], []>} : vector<64x192xbf16>, vector<192x128xbf16>, vector<64x128xf32> -> vector<64x128xf32>
    %16 = arith.addf %8, %15 : vector<64x128xf32>
    %c2 = arith.constant 2 : index
    %c0_12 = arith.constant 0 : index
    %17 = vector.load %arg0[%c2, %c0_12] : memref<88x192xf32, #tpu.memory_space<vmem>>, vector<64x192xf32>
    %cst_13 = arith.constant 0.000000e+00 : f32
    %18 = vector.broadcast %cst_13 : f32 to vector<64x192xf32>
    %19 = arith.maximumf %17, %18 : vector<64x192xf32>
    %20 = arith.truncf %19 : vector<64x192xf32> to vector<64x192xbf16>
    %c2_14 = arith.constant 2 : index
    %c0_15 = arith.constant 0 : index
    %c0_16 = arith.constant 0 : index
    %21 = vector.load %arg1[%c2_14, %c0_15, %c0_16] : memref<9x192x128xbf16, #tpu.memory_space<vmem>>, vector<1x192x128xbf16>
    %22 = vector.shape_cast %21 : vector<1x192x128xbf16> to vector<192x128xbf16>
    %cst_17 = arith.constant dense<0.000000e+00> : vector<64x128xf32>
    %23 = tpu.matmul %20, %22, %cst_17 {dimension_numbers = #tpu.dot_dimension_numbers<[1], [0], [0], [1], [0, 0, 1, 1], [], []>} : vector<64x192xbf16>, vector<192x128xbf16>, vector<64x128xf32> -> vector<64x128xf32>
    %24 = arith.addf %16, %23 : vector<64x128xf32>
    %c9 = arith.constant 9 : index
    %c0_18 = arith.constant 0 : index
    %25 = vector.load %arg0[%c9, %c0_18] : memref<88x192xf32, #tpu.memory_space<vmem>>, vector<64x192xf32>
    %cst_19 = arith.constant 0.000000e+00 : f32
    %26 = vector.broadcast %cst_19 : f32 to vector<64x192xf32>
    %27 = arith.maximumf %25, %26 : vector<64x192xf32>
    %28 = arith.truncf %27 : vector<64x192xf32> to vector<64x192xbf16>
    %c3 = arith.constant 3 : index
    %c0_20 = arith.constant 0 : index
    %c0_21 = arith.constant 0 : index
    %29 = vector.load %arg1[%c3, %c0_20, %c0_21] : memref<9x192x128xbf16, #tpu.memory_space<vmem>>, vector<1x192x128xbf16>
    %30 = vector.shape_cast %29 : vector<1x192x128xbf16> to vector<192x128xbf16>
    %cst_22 = arith.constant dense<0.000000e+00> : vector<64x128xf32>
    %31 = tpu.matmul %28, %30, %cst_22 {dimension_numbers = #tpu.dot_dimension_numbers<[1], [0], [0], [1], [0, 0, 1, 1], [], []>} : vector<64x192xbf16>, vector<192x128xbf16>, vector<64x128xf32> -> vector<64x128xf32>
    %32 = arith.addf %24, %31 : vector<64x128xf32>
    %c10 = arith.constant 10 : index
    %c0_23 = arith.constant 0 : index
    %33 = vector.load %arg0[%c10, %c0_23] : memref<88x192xf32, #tpu.memory_space<vmem>>, vector<64x192xf32>
    %cst_24 = arith.constant 0.000000e+00 : f32
    %34 = vector.broadcast %cst_24 : f32 to vector<64x192xf32>
    %35 = arith.maximumf %33, %34 : vector<64x192xf32>
    %36 = arith.truncf %35 : vector<64x192xf32> to vector<64x192xbf16>
    %c4 = arith.constant 4 : index
    %c0_25 = arith.constant 0 : index
    %c0_26 = arith.constant 0 : index
    %37 = vector.load %arg1[%c4, %c0_25, %c0_26] : memref<9x192x128xbf16, #tpu.memory_space<vmem>>, vector<1x192x128xbf16>
    %38 = vector.shape_cast %37 : vector<1x192x128xbf16> to vector<192x128xbf16>
    %cst_27 = arith.constant dense<0.000000e+00> : vector<64x128xf32>
    %39 = tpu.matmul %36, %38, %cst_27 {dimension_numbers = #tpu.dot_dimension_numbers<[1], [0], [0], [1], [0, 0, 1, 1], [], []>} : vector<64x192xbf16>, vector<192x128xbf16>, vector<64x128xf32> -> vector<64x128xf32>
    %40 = arith.addf %32, %39 : vector<64x128xf32>
    %c11 = arith.constant 11 : index
    %c0_28 = arith.constant 0 : index
    %41 = vector.load %arg0[%c11, %c0_28] : memref<88x192xf32, #tpu.memory_space<vmem>>, vector<64x192xf32>
    %cst_29 = arith.constant 0.000000e+00 : f32
    %42 = vector.broadcast %cst_29 : f32 to vector<64x192xf32>
    %43 = arith.maximumf %41, %42 : vector<64x192xf32>
    %44 = arith.truncf %43 : vector<64x192xf32> to vector<64x192xbf16>
    %c5 = arith.constant 5 : index
    %c0_30 = arith.constant 0 : index
    %c0_31 = arith.constant 0 : index
    %45 = vector.load %arg1[%c5, %c0_30, %c0_31] : memref<9x192x128xbf16, #tpu.memory_space<vmem>>, vector<1x192x128xbf16>
    %46 = vector.shape_cast %45 : vector<1x192x128xbf16> to vector<192x128xbf16>
    %cst_32 = arith.constant dense<0.000000e+00> : vector<64x128xf32>
    %47 = tpu.matmul %44, %46, %cst_32 {dimension_numbers = #tpu.dot_dimension_numbers<[1], [0], [0], [1], [0, 0, 1, 1], [], []>} : vector<64x192xbf16>, vector<192x128xbf16>, vector<64x128xf32> -> vector<64x128xf32>
    %48 = arith.addf %40, %47 : vector<64x128xf32>
    %c18 = arith.constant 18 : index
    %c0_33 = arith.constant 0 : index
    %49 = vector.load %arg0[%c18, %c0_33] : memref<88x192xf32, #tpu.memory_space<vmem>>, vector<64x192xf32>
    %cst_34 = arith.constant 0.000000e+00 : f32
    %50 = vector.broadcast %cst_34 : f32 to vector<64x192xf32>
    %51 = arith.maximumf %49, %50 : vector<64x192xf32>
    %52 = arith.truncf %51 : vector<64x192xf32> to vector<64x192xbf16>
    %c6 = arith.constant 6 : index
    %c0_35 = arith.constant 0 : index
    %c0_36 = arith.constant 0 : index
    %53 = vector.load %arg1[%c6, %c0_35, %c0_36] : memref<9x192x128xbf16, #tpu.memory_space<vmem>>, vector<1x192x128xbf16>
    %54 = vector.shape_cast %53 : vector<1x192x128xbf16> to vector<192x128xbf16>
    %cst_37 = arith.constant dense<0.000000e+00> : vector<64x128xf32>
    %55 = tpu.matmul %52, %54, %cst_37 {dimension_numbers = #tpu.dot_dimension_numbers<[1], [0], [0], [1], [0, 0, 1, 1], [], []>} : vector<64x192xbf16>, vector<192x128xbf16>, vector<64x128xf32> -> vector<64x128xf32>
    %56 = arith.addf %48, %55 : vector<64x128xf32>
    %c19 = arith.constant 19 : index
    %c0_38 = arith.constant 0 : index
    %57 = vector.load %arg0[%c19, %c0_38] : memref<88x192xf32, #tpu.memory_space<vmem>>, vector<64x192xf32>
    %cst_39 = arith.constant 0.000000e+00 : f32
    %58 = vector.broadcast %cst_39 : f32 to vector<64x192xf32>
    %59 = arith.maximumf %57, %58 : vector<64x192xf32>
    %60 = arith.truncf %59 : vector<64x192xf32> to vector<64x192xbf16>
    %c7 = arith.constant 7 : index
    %c0_40 = arith.constant 0 : index
    %c0_41 = arith.constant 0 : index
    %61 = vector.load %arg1[%c7, %c0_40, %c0_41] : memref<9x192x128xbf16, #tpu.memory_space<vmem>>, vector<1x192x128xbf16>
    %62 = vector.shape_cast %61 : vector<1x192x128xbf16> to vector<192x128xbf16>
    %cst_42 = arith.constant dense<0.000000e+00> : vector<64x128xf32>
    %63 = tpu.matmul %60, %62, %cst_42 {dimension_numbers = #tpu.dot_dimension_numbers<[1], [0], [0], [1], [0, 0, 1, 1], [], []>} : vector<64x192xbf16>, vector<192x128xbf16>, vector<64x128xf32> -> vector<64x128xf32>
    %64 = arith.addf %56, %63 : vector<64x128xf32>
    %c20 = arith.constant 20 : index
    %c0_43 = arith.constant 0 : index
    %65 = vector.load %arg0[%c20, %c0_43] : memref<88x192xf32, #tpu.memory_space<vmem>>, vector<64x192xf32>
    %cst_44 = arith.constant 0.000000e+00 : f32
    %66 = vector.broadcast %cst_44 : f32 to vector<64x192xf32>
    %67 = arith.maximumf %65, %66 : vector<64x192xf32>
    %68 = arith.truncf %67 : vector<64x192xf32> to vector<64x192xbf16>
    %c8 = arith.constant 8 : index
    %c0_45 = arith.constant 0 : index
    %c0_46 = arith.constant 0 : index
    %69 = vector.load %arg1[%c8, %c0_45, %c0_46] : memref<9x192x128xbf16, #tpu.memory_space<vmem>>, vector<1x192x128xbf16>
    %70 = vector.shape_cast %69 : vector<1x192x128xbf16> to vector<192x128xbf16>
    %cst_47 = arith.constant dense<0.000000e+00> : vector<64x128xf32>
    %71 = tpu.matmul %68, %70, %cst_47 {dimension_numbers = #tpu.dot_dimension_numbers<[1], [0], [0], [1], [0, 0, 1, 1], [], []>} : vector<64x192xbf16>, vector<192x128xbf16>, vector<64x128xf32> -> vector<64x128xf32>
    %72 = arith.addf %64, %71 : vector<64x128xf32>
    %c0_48 = arith.constant 0 : index
    %c0_49 = arith.constant 0 : index
    %73 = vector.load %arg2[%c0_48, %c0_49] : memref<64x128xf32, #tpu.memory_space<vmem>>, vector<64x128xf32>
    tpu.vector_store %arg2[%c0_48, %c0_49], %72 {strides = array<i32>} : memref<64x128xf32, #tpu.memory_space<vmem>>, vector<64x128xf32>,
    return
  }
}

</mosaic_0001>

<bundles_post_ra>
// kernel: relu_conv2d_pallas.1
= control target key start
LH: loop header
LB: loop body
LE: loop exit
PB: predicated region body
PF: predicated region fallthrough
CT: control target
= control target key end

     0   :  { %vm262_vm0 = vcmask 523264   ;;  %vm113_vm1 = vsmask.f32 7424  ;;  %vm519_vm2 = vcmask 1046528   ;;  %vm1245_vm3 = vsmask.f32 6400  ;;  %s4228_s1 = inlined_call_operand.vmem [shape: bf16[9,192,128], index: 1, kind: input, shape index: {}]   ;;  %s4229_s0 = inlined_call_operand.vmem [shape: f32[88,192], index: 0, kind: input, shape index: {}]   ;;  %s4230_s2 = inlined_call_operand.vmem [shape: f32[64,128], index: 2, kind: output, shape index: {}]  }
   0x1   :  { %v2895_v0 = vld [vmem:[%s4228_s1 + $0x98] sm:$0xff]  ;;  %v2894_v3 = vld [vmem:[%s4228_s1 + $0x90] sm:$0xff]  ;;  %v2893_v7 = vld [vmem:[%s4228_s1 + $0x88] sm:$0xff]  ;;  %vm2031_vm4 = vcmask 1045504  }
   0x2   :  { %v2883_v1 = vld [vmem:[%s4228_s1 + $0x38] sm:$0xff]  ;;  %275 = vmatpush.bf16.msra.mxu0 %v2895_v0  ;;  %v2882_v4 = vld [vmem:[%s4228_s1 + $0x30] sm:$0xff]  ;;  %v2881_v8 = vld [vmem:[%s4228_s1 + $0x28] sm:$0xff] }
   0x3   :  { %v3016_v2 = vld [vmem:[%s4228_s1 + $0x58] sm:$0xff]  ;;  %414 = vmatpush.bf16.msra.mxu2 %v2883_v1  ;;  %v3028_v5 = vld [vmem:[%s4228_s1 + $0x50] sm:$0xff]  ;;  %v17_v9 = vld [vmem:[%s4229_s0 + $0x28] sm:$0xff] }
   0x4   :  { %2988 = vmatpush.bf16.msra.mxu3 %v3016_v2  ;;  %v3033_v6 = vld [vmem:[%s4228_s1 + $0xb8] sm:$0xff]  ;;  %v3053_v11 = vld [vmem:[%s4228_s1 + $0x48] sm:$0xff]  ;;  %v3059_v12 = vld [vmem:[%s4228_s1 + $0xb0] sm:$0xff]  ;;  %v3072_v16 = vmax.f32 %v17_v9, 0.0 }
   0x5   :  { %v3047_v10 = vld [vmem:[%s4229_s0 + $0x38] sm:$0xff]  ;;  %2984 = vmatpush.bf16.msra.mxu1 %v3033_v6  ;;  %v2892_v13 = vld [vmem:[%s4228_s1 + $0x80] sm:$0xff]  ;;  %v3078_v18 = vld [vmem:[%s4229_s0 + $0x48] sm:$0xff] }
   0x6   :  { %276 = vmatpush.bf16.msra.mxu0 %v2894_v3  ;;  %v2880_v14 = vld [vmem:[%s4228_s1 + $0x20] sm:$0xff]  ;;  %v35_v17 = vmax.f32 %v3047_v10, 0.0  ;;  %v3083_v19 = vld [vmem:[%s4229_s0 + $0x58] sm:$0xff]  ;;  %v3088_v20 = vld [vmem:[%s4228_s1 + $0xa8] sm:$0xff]  ;;  %v37_v23 = vmax.f32 %v3078_v18, 0.0 }
   0x7   :  { %415 = vmatpush.bf16.msra.mxu2 %v2882_v4  ;;  %v3070_v15 = vld [vmem:[%s4228_s1 + $0x40] sm:$0xff]  ;;  %v3093_v21 = vld [vmem:[%s4229_s0 + $0x68] sm:$0xff]  ;;  %v3098_v22 = vld [vmem:[%s4229_s0 + $0x78] sm:$0xff]  ;;  %v39_v24 = vmax.f32 %v3083_v19, 0.0 }
   0x8   :  { %2989 = vmatpush.bf16.msra.mxu3 %v3028_v5  ;;  %v41_v25 = vmax.f32 %v3093_v21, 0.0  ;;  %v43_v26 = vmax.f32 %v3098_v22, 0.0  ;;  %v14_v27 = vld [vmem:[%s4229_s0 + $0x10] sm:$0xff]  ;;  %v16_v28 = vld [vmem:[%s4229_s0 + $0x20] sm:$0xff]  ;;  %v2911_v30 = vld [vmem:[%s4228_s1 + $0x118] sm:$0xff]  ;;  %v3134_v34 = vpack.c.bf16 %v35_v17, %v3072_v16 }
   0x9   :  { %2985 = vmatpush.bf16.msra.mxu1 %v3059_v12  ;;  %v3115_v29 = vld [vmem:[%s4229_s0 + $0x30] sm:$0xff]  ;;  %v3124_v31 = vpack.c.bf16 %v39_v24, %v37_v23  ;;  %v3126_v32 = vmax.f32 %v14_v27, 0.0  ;;  %v76_v33 = vld [vmem:[%s4229_s0] sm:$0xfe]  ;;  %v2891_v37 = vld [vmem:[%s4228_s1 + $0x78] sm:$0xff]  ;;  %v3147_v40 = vmax.f32 %v16_v28, 0.0 }
   0xa   :  { %277 = vmatpush.bf16.msra.mxu0 %v2893_v7  ;;  %v3140_v35 = vpack.c.bf16 %v43_v26, %v41_v25  ;;  %v80_v36 = vmax.f32 %v76_v33, 0.0  ;;  %v34_v41 = vmax.f32 %v3115_v29, 0.0  ;;  %v2879_v42 = vld [vmem:[%s4228_s1 + $0x18] sm:$0xff]  ;;  %v3158_v43 = vld [vmem:[%s4228_s1 + $0xa0] sm:$0xff]  ;;  %v2910_v46 = vld [vmem:[%s4228_s1 + $0x110] sm:$0xff] }
   0xb   :  { %416 = vmatpush.bf16.msra.mxu2 %v2881_v8  ;;  %v150_v38 = vshll.u32 %v3124_v31, 16  ;;  %v162_v39 = vshrl.u32 %v3124_v31, 16  ;;  %v2907_v48 = vld [vmem:[%s4228_s1 + $0xf8] sm:$0xff]  ;;  %v79_v49 = vld [vmem:[%s4229_s0 + $0x88] sm:$0x1]  ;;  %v2890_v51 = vld [vmem:[%s4228_s1 + $0x70] sm:$0xff] }
   0xc   :  { %2990 = vmatpush.bf16.msra.mxu3 %v3053_v11  ;;  %v166_v44 = vshll.u32 %v3140_v35, 16  ;;  %v84_v45 = vpack.c.bf16 %v3126_v32, %v80_v36  ;;  %v3182_v53 = vpack.c.bf16 %v34_v41, %v3147_v40  ;;  %v2878_v55 = vld [vmem:[%s4228_s1 + $0x10] sm:$0xff]  ;;  %v83_v56 = vmax.f32 %v79_v49, 0.0  ;;  %v2909_v59 = vld [vmem:[%s4228_s1 + $0x108] sm:$0xff]  ;;  %v12_v1 = vld [vmem:[%s4229_s0] sm:$0xff] }
   0xd   :  { %2986 = vmatpush.bf16.msra.mxu1 %v3088_v20  ;;  %v3165_v47 = vrot.slane %v150_v38, 1  ;;  %v2906_v58 = vld [vmem:[%s4228_s1 + $0xf0] sm:$0xff]  ;;  %v2889_v60 = vld [vmem:[%s4228_s1 + $0x68] sm:$0xff]  ;;  %v2908_v7 = vld [vmem:[%s4228_s1 + $0x100] sm:$0xff]  ;;  %v178_v28 = vshrl.u32 %v3140_v35, 16 }
   0xe   :  { %278 = vmatpush.bf16.msra.mxu0 %v2892_v13  ;;  %v168_v50 = vrot.slane %v166_v44, 1  ;;  %v117_v54 = vshll.u32 %v84_v45, 16  ;;  %v115_v61 = vshrl.u32 %v84_v45, 16  ;;  %v122_v63 = vshll.u32 %v3182_v53, 16  ;;  %v2877_v0 = vld [vmem:[%s4228_s1 + $0x8] sm:$0xff]  ;;  %v2888_v8 = vld [vmem:[%s4228_s1 + $0x60] sm:$0xff] }
   0xf   :  { %417 = vmatpush.bf16.msra.mxu2 %v2880_v14  ;;  %v164_v52 = vor.u32 %v162_v39, %v3165_v47  ;;  %v87_v3 = vpack.c.bf16 %v83_v56, %v83_v56  ;;  %v2905_v4 = vld [vmem:[%s4228_s1 + $0xe8] sm:$0xff]  ;;  %v28_v14 = vmax.f32 %v12_v1, 0.0  ;;  %v2876_v27 = vld [vmem:[%s4228_s1] sm:$0xff]  ;;  %v3227_v36 = vld [vmem:[%s4229_s0 + $0x50] sm:$0xff] }
  0x10   :  { %2991 = vmatpush.bf16.msra.mxu3 %v3070_v15  ;;  %v119_v62 = vrot.slane %v117_v54, 1  ;;  %v124_v13 = vrot.slane %v122_v63, 1  ;;  %v3222_v33 = vld [vmem:[%s4229_s0 + $0x40] sm:$0xff]  ;;  %v38_v44 = vmax.f32 %v3227_v36, 0.0  ;;  %v180_v45 = vor.u32 %v178_v28, %v168_v50  ;;  %v15_v63 = vld [vmem:[%s4229_s0 + $0x18] sm:$0xff]  ;;  %v2946_v10 = vld [vmem:[%s4228_s1 + $0x230] sm:$0xff] }
  0x11   :  { %2987 = vmatpush.bf16.msra.mxu1 %v3158_v43  ;;  %v169_v57 = vsel %vm113_vm1, %v164_v52, %v168_v50  ;;  %v44_v39 = vpack.c.bf16 %v3126_v32, %v28_v14  ;;  %v2902_v50 = vld [vmem:[%s4228_s1 + $0xd0] sm:$0xff]  ;;  %v138_v52 = vshrl.u32 %v3182_v53, 16  ;;  %v990_v29 = vld [vmem:[%s4229_s0 + $0x18] sm:$0xfc]  ;;  %v2952_v36 = vld [vmem:[%s4228_s1 + $0x260] sm:$0xff] }
  0x12   :  { %279 = vmatpush.bf16.msra.mxu0 %v2891_v37  ;;  %v120_v9 = vor.u32 %v119_v62, %v115_v61  ;;  %v2904_v37 = vld [vmem:[%s4228_s1 + $0xe0] sm:$0xff]  ;;  %v2951_v22 = vld [vmem:[%s4228_s1 + $0x258] sm:$0xff] }
  0x13   :  { %2341 = vmatmul.msk.bf16.vlgmr.msra.gmra.mxu3 %vm262_vm0, %v3134_v34  ;;  %418 = vmatpush.bf16.msra.mxu2 %v2879_v42  ;;  %v36_v42 = vmax.f32 %v3222_v33, 0.0  ;;  %v2958_v33 = vld [vmem:[%s4228_s1 + $0x290] sm:$0xff] }
  0x14   :  { %659 = vmatpush.bf16.msrb.mxu3 %v2911_v30  ;;  %2290 = vmatmul.msk.bf16.vlgmr.msra.gmra.mxu1 %vm262_vm0, %v169_v57  ;;  %v182_v30 = vshll.u32 %v87_v3, 16  ;;  %v125_v38 = vsel %vm113_vm1, %v120_v9, %v124_v13  ;;  %v2934_v3 = vld [vmem:[%s4228_s1 + $0x1d0] sm:$0xff] }
  0x15   :  { %626 = vmatpush.bf16.msrb.mxu1 %v2907_v48  ;;  %v2903_v48 = vld [vmem:[%s4228_s1 + $0xd8] sm:$0xff]  ;;  %v3247_v49 = vpack.c.bf16 %v38_v44, %v36_v42 }
  0x16   :  { %280 = vmatpush.bf16.msra.mxu0 %v2890_v51  ;;  %v472_v51 = vld [vmem:[%s4229_s0] sm:$0xfc] }
  0x17   :  { %419 = vmatpush.bf16.msra.mxu2 %v2878_v55  ;;  %v142_v54 = vshll.u32 %v3247_v49, 16  ;;  %v476_v55 = vmax.f32 %v472_v51, 0.0  ;;  %v154_v9 = vshrl.u32 %v3247_v49, 16 }
  0x18   :  { %660 = vmatpush.bf16.msrb.mxu3 %v2910_v46  ;;  %v184_v46 = vrot.slane %v182_v30, 1 }
  0x19   :  { %627 = vmatpush.bf16.msrb.mxu1 %v2906_v58  ;;  %v144_v56 = vrot.slane %v142_v54, 1  ;;  %v480_v57 = vpack.c.bf16 %v3126_v32, %v476_v55  ;;  %v3275_v58 = vld [vmem:[%s4229_s0 + $0x60] sm:$0xff]  ;;  %v2931_v32 = vld [vmem:[%s4228_s1 + $0x1b8] sm:$0xff] }
  0x1a   :  { %281 = vmatpush.bf16.msra.mxu0 %v2889_v60  ;;  %v40_v60 = vmax.f32 %v3275_v58, 0.0 }
  0x1b   :  { %420 = vmatpush.bf16.msra.mxu2 %v2877_v0  ;;  %v520_v62 = vrot.slane %v480_v57, 1  ;;  %v2930_v0 = vld [vmem:[%s4228_s1 + $0x1b0] sm:$0xff]  ;;  %v156_v28 = vor.u32 %v154_v9, %v144_v56 }
  0x1c   :  { %661 = vmatpush.bf16.msrb.mxu3 %v2909_v59  ;;  %v2918_v57 = vld [vmem:[%s4228_s1 + $0x150] sm:$0xff] }
  0x1d   :  { %628 = vmatpush.bf16.msrb.mxu1 %v2905_v4 }
  0x1e   :  { %282 = vmatpush.bf16.msra.mxu0 %v2888_v8 }
  0x1f   :  { %421 = vmatpush.bf16.msra.mxu2 %v2876_v27  ;;  %v2928_v27 = vld [vmem:[%s4228_s1 + $0x1a0] sm:$0xff] }
  0x20   :  { %662 = vmatpush.bf16.msrb.mxu3 %v2908_v7  ;;  %v3316_v7 = vmax.f32 %v15_v63, 0.0  ;;  %v2926_v63 = vld [vmem:[%s4228_s1 + $0x190] sm:$0xff] }
  0x21   :  { %629 = vmatpush.bf16.msrb.mxu1 %v2904_v37  ;;  %283 = vmatmul.bf16.vlgmr.msra.gmra.mxu0 %v125_v38  ;;  %v524_v38 = vrot.slane %v3134_v34, 1 }
  0x22   :  { %308 = vmatpush.bf16.msrb.mxu0 %v3033_v6  ;;  %422 = vmatmul.bf16.vlgmr.msra.gmra.mxu2 %v44_v39  ;;  %v2935_v6 = vld [vmem:[%s4228_s1 + $0x1d8] sm:$0xff]  ;;  %v78_v39 = vld [vmem:[%s4229_s0 + $0x80] sm:$0x1] }
  0x23   :  { %447 = vmatpush.bf16.msrb.mxu2 %v3016_v2  ;;  %2342 = vmatmul.msk.bf16.gmra.mxu3 %vm262_vm0, %v3124_v31  ;;  %v185_v2 = vsel %vm113_vm1, %v180_v45, %v184_v46  ;;  %v82_v46 = vmax.f32 %v78_v39, 0.0 }
  0x24   :  { %1175 = vmatpush.bf16.msra.mxu3 %v2935_v6  ;;  %2291 = vmatmul.msk.bf16.gmra.mxu1 %vm262_vm0, %v185_v2  ;;  %v3336_v6 = vrot.slane %v3247_v49, 1  ;;  %v528_v2 = vrot.slane %v3124_v31, 1  ;;  %v2933_v31 = vld [vmem:[%s4228_s1 + $0x1c8] sm:$0xff] }
  0x25   :  { %630 = vmatpush.bf16.msrb.mxu1 %v2903_v48  ;;  %v86_v55 = vpack.c.bf16 %v82_v46, %v82_v46  ;;  %v2932_v46 = vld [vmem:[%s4228_s1 + $0x1c0] sm:$0xff] }
  0x26   :  { %309 = vmatpush.bf16.msrb.mxu0 %v3059_v12  ;;  %v2901_v12 = vld [vmem:[%s4228_s1 + $0xc8] sm:$0xff]  ;;  %v529_v39 = vsel %vm519_vm2, %v524_v38, %v528_v2 }
  0x27   :  { %448 = vmatpush.bf16.msrb.mxu2 %v3028_v5  ;;  %v140_v5 = vor.u32 %v138_v52, %v124_v13  ;;  %v2919_v52 = vld [vmem:[%s4228_s1 + $0x158] sm:$0xff] }
  0x28   :  { %1176 = vmatpush.bf16.msra.mxu3 %v2934_v3  ;;  %v2917_v3 = vld [vmem:[%s4228_s1 + $0x148] sm:$0xff] }
  0x29   :  { %631 = vmatpush.bf16.msrb.mxu1 %v2902_v50  ;;  %v145_v59 = vsel %vm113_vm1, %v140_v5, %v144_v56  ;;  %v532_v50 = vrot.slane %v3140_v35, 1  ;;  %v2927_v5 = vld [vmem:[%s4228_s1 + $0x198] sm:$0xff] }
  0x2a   :  { %310 = vmatpush.bf16.msrb.mxu0 %v3088_v20  ;;  %v3280_v20 = vld [vmem:[%s4229_s0 + $0x70] sm:$0xff] }
  0x2b   :  { %449 = vmatpush.bf16.msrb.mxu2 %v3053_v11  ;;  %v2900_v11 = vld [vmem:[%s4228_s1 + $0xc0] sm:$0xff]  ;;  %v42_v61 = vmax.f32 %v3280_v20, 0.0  ;;  %v3343_v51 = vsel %vm519_vm2, %v528_v2, %v532_v50  ;;  %v2914_v2 = vld [vmem:[%s4228_s1 + $0x130] sm:$0xff] }
  0x2c   :  { %1177 = vmatpush.bf16.msra.mxu3 %v2933_v31  ;;  %v2950_v20 = vld [vmem:[%s4228_s1 + $0x250] sm:$0xff] }
  0x2d   :  { %632 = vmatpush.bf16.msrb.mxu1 %v2901_v12  ;;  %v3310_v1 = vpack.c.bf16 %v42_v61, %v40_v60  ;;  %v134_v12 = vshll.u32 %v3134_v34, 16 }
  0x2e   :  { %311 = vmatpush.bf16.msrb.mxu0 %v3158_v43  ;;  %v521_v43 = vrot.slane %v3182_v53, 1 }
  0x2f   :  { %450 = vmatpush.bf16.msrb.mxu2 %v3070_v15  ;;  %v473_v15 = vld [vmem:[%s4229_s0 + $0x8] sm:$0xfc]  ;;  %v158_v13 = vshll.u32 %v3310_v1, 16 }
  0x30   :  { %v522_v4 = vsel %vm519_vm2, %v520_v62, %v521_v43  ;;  %v477_v8 = vmax.f32 %v473_v15, 0.0  ;;  %v527_v56 = vsel %vm519_vm2, %v521_v43, %v3336_v6  ;;  %v174_v62 = vshll.u32 %v86_v55, 16  ;;  %1178 = vmatpush.bf16.msra.mxu3 %v2932_v46  ;;  %v2924_v55 = vld [vmem:[%s4228_s1 + $0x180] sm:$0xff] }
  0x31   :  { %633 = vmatpush.bf16.msrb.mxu1 %v2900_v11  ;;  %288 = vmatmul.bf16.gmra.mxu0 %v145_v59  ;;  %v160_v30 = vrot.slane %v158_v13, 1  ;;  %v2923_v11 = vld [vmem:[%s4228_s1 + $0x178] sm:$0xff]  ;;  %v170_v59 = vshrl.u32 %v3310_v1, 16  ;;  %v136_v43 = vrot.slane %v134_v12, 1  ;;  %v146_v15 = vshrl.u32 %v3134_v34, 16 }
  0x32   :  { %427 = vmatmul.bf16.gmra.mxu2 %v3182_v53  ;;  %v2929_v53 = vld [vmem:[%s4228_s1 + $0x1a8] sm:$0xff]  ;;  %v481_v14 = vpack.c.bf16 %v3316_v7, %v477_v8  ;;  %923 = vmatpush.bf16.msra.mxu0 %v2919_v52  ;;  %v176_v13 = vrot.slane %v174_v62, 1  ;;  %v474_v52 = vld [vmem:[%s4229_s0 + $0x80] sm:$0x3] }
  0x33   :  { %2343 = vmatmul.msk.bf16.gmra.mxu3 %vm262_vm0, %v3140_v35  ;;  %v161_v45 = vsel %vm113_vm1, %v156_v28, %v160_v30  ;;  %956 = vmatpush.bf16.msra.mxu2 %v2923_v11  ;;  %v2921_v8 = vld [vmem:[%s4228_s1 + $0x168] sm:$0xff]  ;;  %v693_v11 = vld [vmem:[%s4229_s0 + $0x18] sm:$0xfe]  ;;  %v994_v35 = vmax.f32 %v990_v29, 0.0 }
  0x34   :  { %634 = vmatmul.bf16.vlgmr.msrb.gmra.mxu1 %v522_v4  ;;  %v523_v37 = vrot.slane %v481_v14, 1  ;;  %v148_v4 = vor.u32 %v146_v15, %v136_v43  ;;  %v2912_v15 = vld [vmem:[%s4228_s1 + $0x120] sm:$0xff] }
  0x35   :  { %1142 = vmatpush.bf16.msra.mxu1 %v2931_v32  ;;  %v2922_v32 = vld [vmem:[%s4228_s1 + $0x170] sm:$0xff]  ;;  %v998_v19 = vpack.c.bf16 %v3072_v16, %v994_v35 }
  0x36   :  { %v525_v48 = vsel %vm519_vm2, %v523_v37, %v524_v38  ;;  %924 = vmatpush.bf16.msra.mxu0 %v2918_v57  ;;  %v3384_v34 = vsel %vm113_vm1, %v148_v4, %v3165_v47  ;;  %v2915_v47 = vld [vmem:[%s4228_s1 + $0x138] sm:$0xff]  ;;  %v2920_v38 = vld [vmem:[%s4228_s1 + $0x160] sm:$0xff]  ;;  %v2913_v57 = vld [vmem:[%s4228_s1 + $0x128] sm:$0xff] }
  0x37   :  { %957 = vmatpush.bf16.msra.mxu2 %v2922_v32 }
  0x39   :  { %1143 = vmatpush.bf16.msra.mxu1 %v2930_v0  ;;  %v77_v0 = vld [vmem:[%s4229_s0 + $0x8] sm:$0xfe] }
  0x3a   :  { %v81_v14 = vmax.f32 %v77_v0, 0.0  ;;  %925 = vmatpush.bf16.msra.mxu0 %v2917_v3 }
  0x3b   :  { %958 = vmatpush.bf16.msra.mxu2 %v2921_v8  ;;  %v475_v8 = vld [vmem:[%s4229_s0 + $0x88] sm:$0x3] }
  0x3c   :  { %v85_v37 = vpack.c.bf16 %v3316_v7, %v81_v14  ;;  %v2943_v14 = vld [vmem:[%s4228_s1 + $0x218] sm:$0xff] }
  0x3d   :  { %1144 = vmatpush.bf16.msra.mxu1 %v2929_v53  ;;  %v172_v53 = vor.u32 %v170_v59, %v160_v30  ;;  %v530_v30 = vrot.slane %v3310_v1, 1 }
  0x3e   :  { %v127_v12 = vshrl.u32 %v85_v37, 16 }
  0x3f   :  { %v177_v28 = vsel %vm113_vm1, %v172_v53, %v176_v13  ;;  %959 = vmatpush.bf16.msra.mxu2 %v2920_v38  ;;  %v2947_v13 = vld [vmem:[%s4228_s1 + $0x238] sm:$0xff]  ;;  %v692_v38 = vld [vmem:[%s4229_s0 + $0x10] sm:$0xfe] }
  0x41   :  { %1145 = vmatpush.bf16.msra.mxu1 %v2928_v27  ;;  %293 = vmatmul.bf16.gmra.mxu0 %v161_v45  ;;  %v2916_v27 = vld [vmem:[%s4228_s1 + $0x140] sm:$0xff]  ;;  %v129_v45 = vshll.u32 %v85_v37, 16 }
  0x42   :  { %432 = vmatmul.bf16.gmra.mxu2 %v3247_v49  ;;  %926 = vmatpush.bf16.msra.mxu0 %v2916_v27  ;;  %v2955_v27 = vld [vmem:[%s4228_s1 + $0x278] sm:$0xff] }
  0x43   :  { %2416 = vmatmul.msk.bf16.vlgmr.msrb.gmra.mxu3 %vm262_vm0, %v525_v48  ;;  %v531_v48 = vsel %vm519_vm2, %v3336_v6, %v530_v30  ;;  %v131_v31 = vrot.slane %v129_v45, 1 }
  0x44   :  { %639 = vmatmul.bf16.gmra.mxu1 %v527_v56  ;;  %v478_v56 = vmax.f32 %v474_v52, 0.0 }
  0x45   :  { %1146 = vmatpush.bf16.msra.mxu1 %v2927_v5  ;;  %v13_v5 = vld [vmem:[%s4229_s0 + $0x8] sm:$0xff]  ;;  %v132_v32 = vor.u32 %v131_v31, %v127_v12 }
  0x46   :  { %927 = vmatpush.bf16.msra.mxu0 %v2915_v47  ;;  %v29_v59 = vmax.f32 %v13_v5, 0.0  ;;  %v482_v62 = vpack.c.bf16 %v478_v56, %v478_v56  ;;  %v2942_v47 = vld [vmem:[%s4228_s1 + $0x210] sm:$0xff] }
  0x47   :  { %v137_v0 = vsel %vm113_vm1, %v132_v32, %v136_v43  ;;  %v2959_v43 = vld [vmem:[%s4228_s1 + $0x298] sm:$0xff]  ;;  %v2953_v32 = vld [vmem:[%s4228_s1 + $0x268] sm:$0xff] }
  0x48   :  { %v45_v3 = vpack.c.bf16 %v3316_v7, %v29_v59  ;;  %v534_v4 = vrot.slane %v482_v62, 1  ;;  %v479_v7 = vmax.f32 %v475_v8, 0.0  ;;  %1678 = vmatpush.bf16.msrb.mxu3 %v2959_v43 }
  0x49   :  { %1147 = vmatpush.bf16.msra.mxu1 %v2926_v63  ;;  %v711_v63 = vmax.f32 %v693_v11, 0.0 }
  0x4a   :  { %928 = vmatpush.bf16.msra.mxu0 %v2914_v2  ;;  %v710_v2 = vmax.f32 %v692_v38, 0.0 }
  0x4b   :  { %v729_v53 = vpack.c.bf16 %v3072_v16, %v711_v63 }
  0x4c   :  { %v728_v31 = vpack.c.bf16 %v3147_v40, %v710_v2  ;;  %1679 = vmatpush.bf16.msrb.mxu3 %v2958_v33 }
  0x4d   :  { %v778_v37 = vshll.u32 %v729_v53, 16  ;;  %v776_v18 = vshrl.u32 %v729_v53, 16  ;;  %v3528_v53 = vpack.c.bf16 %v40_v60, %v38_v44 }
  0x4e   :  { %929 = vmatpush.bf16.msra.mxu0 %v2913_v57  ;;  %v764_v59 = vshrl.u32 %v728_v31, 16 }
  0x4f   :  { %v1042_v60 = vrot.slane %v3528_v53, 1 }
  0x51   :  { %298 = vmatmul.bf16.gmra.mxu0 %v177_v28  ;;  %v535_v28 = vsel %vm519_vm2, %v530_v30, %v534_v4  ;;  %v483_v30 = vpack.c.bf16 %v479_v7, %v479_v7  ;;  %v2940_v7 = vld [vmem:[%s4228_s1 + $0x200] sm:$0xff] }
  0x52   :  { %437 = vmatmul.bf16.gmra.mxu2 %v3310_v1  ;;  %v2925_v1 = vld [vmem:[%s4228_s1 + $0x188] sm:$0xff]  ;;  %930 = vmatpush.bf16.msra.mxu0 %v2912_v15 }
  0x53   :  { %2417 = vmatmul.msk.bf16.gmra.mxu3 %vm262_vm0, %v529_v39  ;;  %1148 = vmatpush.bf16.msra.mxu1 %v2925_v1  ;;  %v989_v39 = vld [vmem:[%s4229_s0 + $0x10] sm:$0xfc] }
  0x54   :  { %644 = vmatmul.bf16.gmra.mxu1 %v531_v48  ;;  %v993_v46 = vmax.f32 %v989_v39, 0.0  ;;  %v536_v48 = vrot.slane %v483_v30, 1  ;;  %v2939_v30 = vld [vmem:[%s4228_s1 + $0x1f8] sm:$0xff] }
  0x56   :  { %v997_v12 = vpack.c.bf16 %v3147_v40, %v993_v46  ;;  %v537_v5 = vsel %vm519_vm2, %v532_v50, %v536_v48  ;;  %v3505_v50 = vpack.c.bf16 %v41_v25, %v39_v24 }
  0x57   :  { %1149 = vmatpush.bf16.msra.mxu1 %v2924_v55  ;;  %v3481_v55 = vpack.c.bf16 %v36_v42, %v34_v41  ;;  %v766_v41 = vshll.u32 %v728_v31, 16  ;;  %v2938_v31 = vld [vmem:[%s4228_s1 + $0x1f0] sm:$0xff] }
  0x58   :  { %v1036_v57 = vrot.slane %v997_v12, 1  ;;  %v799_v24 = vshll.u32 %v3505_v50, 16  ;;  %v1044_v48 = vrot.slane %v3505_v50, 1  ;;  %v709_v12 = vld [vmem:[%s4229_s0 + $0x98] sm:$0x1] }
  0x59   :  { %v1037_v11 = vrot.slane %v3481_v55, 1  ;;  %v768_v62 = vrot.slane %v766_v41, 1  ;;  %v771_v63 = vshll.u32 %v3481_v55, 16  ;;  %v727_v29 = vmax.f32 %v709_v12, 0.0  ;;  %v2956_v41 = vld [vmem:[%s4228_s1 + $0x280] sm:$0xff] }
  0x5a   :  { %v801_v8 = vrot.slane %v799_v24, 1 }
  0x5b   :  { %1645 = vmatpush.bf16.msrb.mxu1 %v2955_v27  ;;  %v1038_v42 = vsel %vm519_vm2, %v1036_v57, %v1037_v11  ;;  %v769_v25 = vor.u32 %v768_v62, %v764_v59  ;;  %v773_v15 = vrot.slane %v771_v63, 1  ;;  %v2937_v59 = vld [vmem:[%s4228_s1 + $0x1e8] sm:$0xff]  ;;  %v803_v62 = vshrl.u32 %v3528_v53, 16 }
  0x5d   :  { %v774_v43 = vsel %vm113_vm1, %v769_v25, %v773_v15  ;;  %v2949_v25 = vld [vmem:[%s4228_s1 + $0x248] sm:$0xff] }
  0x61   :  { %2288 = vmatmul.msk.bf16.vlgmr.msrb.gmra.mxu0 %vm262_vm0, %v137_v0  ;;  %v1039_v0 = vrot.slane %v998_v19, 1 }
  0x62   :  { %2340 = vmatmul.msk.bf16.vlgmr.msrb.gmra.mxu2 %vm262_vm0, %v45_v3  ;;  %1392 = vmatpush.bf16.msrb.mxu0 %v2943_v14  ;;  %v2945_v14 = vld [vmem:[%s4228_s1 + $0x228] sm:$0xff] }
  0x63   :  { %2418 = vmatmul.msk.bf16.gmra.mxu3 %vm262_vm0, %v3343_v51  ;;  %v3457_v51 = vpack.c.bf16 %v37_v23, %v35_v17  ;;  %1425 = vmatpush.bf16.msrb.mxu2 %v2947_v13  ;;  %v2954_v17 = vld [vmem:[%s4228_s1 + $0x270] sm:$0xff]  ;;  %v780_v23 = vrot.slane %v778_v37, 1  ;;  %v3533_v13 = vld [vmem:[%s4229_s0 + $0x88] sm:$0xff]  ;;  %v1043_v37 = vsel %vm519_vm2, %v1037_v11, %v1042_v60 }
  0x64   :  { %649 = vmatmul.bf16.gmra.mxu1 %v535_v28  ;;  %v725_v27 = vmax.f32 %v3533_v13, 0.0  ;;  %v2957_v28 = vld [vmem:[%s4228_s1 + $0x288] sm:$0xff] }
  0x65   :  { %v783_v45 = vshll.u32 %v3457_v51, 16  ;;  %1646 = vmatpush.bf16.msrb.mxu1 %v2954_v17  ;;  %v781_v1 = vor.u32 %v780_v23, %v776_v18  ;;  %v795_v21 = vshrl.u32 %v3457_v51, 16  ;;  %v1040_v3 = vrot.slane %v3457_v51, 1  ;;  %1680 = vmatpush.bf16.msrb.mxu3 %v2957_v28 }
  0x66   :  { %1393 = vmatpush.bf16.msrb.mxu0 %v2942_v47  ;;  %v3559_v39 = vpack.c.bf16 %v725_v27, %v43_v26  ;;  %v3564_v47 = vld [vmem:[%s4229_s0 + $0x80] sm:$0xff]  ;;  %v791_v17 = vshll.u32 %v3528_v53, 16  ;;  %v811_v26 = vshrl.u32 %v3505_v50, 16  ;;  %v2963_v53 = vld [vmem:[%s4228_s1 + $0x2b8] sm:$0xff] }
  0x67   :  { %1426 = vmatpush.bf16.msrb.mxu2 %v2946_v10  ;;  %v785_v52 = vrot.slane %v783_v45, 1  ;;  %v1041_v44 = vsel %vm519_vm2, %v1039_v0, %v1040_v3  ;;  %v787_v10 = vshrl.u32 %v3481_v55, 16  ;;  %v724_v23 = vmax.f32 %v3564_v47, 0.0  ;;  %v2977_v55 = vld [vmem:[%s4228_s1 + $0x328] sm:$0xff] }
  0x68   :  { %v815_v18 = vshll.u32 %v3559_v39, 16  ;;  %v793_v38 = vrot.slane %v791_v17, 1  ;;  %v813_v2 = vor.u32 %v811_v26, %v801_v8 }
  0x69   :  { %v786_v56 = vsel %vm113_vm1, %v781_v1, %v785_v52  ;;  %1647 = vmatpush.bf16.msrb.mxu1 %v2953_v32  ;;  %v797_v4 = vor.u32 %v795_v21, %v785_v52  ;;  %v789_v46 = vor.u32 %v787_v10, %v773_v15  ;;  %v3590_v52 = vpack.c.bf16 %v724_v23, %v42_v61 }
  0x6a   :  { %v817_v1 = vrot.slane %v815_v18, 1  ;;  %v1045_v61 = vsel %vm519_vm2, %v1040_v3, %v1044_v48  ;;  %1681 = vmatpush.bf16.msrb.mxu3 %v2956_v41  ;;  %v827_v15 = vshrl.u32 %v3559_v39, 16 }
  0x6b   :  { %v802_v58 = vsel %vm113_vm1, %v797_v4, %v801_v8  ;;  %1427 = vmatpush.bf16.msrb.mxu2 %v2945_v14  ;;  %v1046_v11 = vrot.slane %v3590_v52, 1  ;;  %v807_v19 = vshll.u32 %v3590_v52, 16  ;;  %v1209_v4 = vld [vmem:[%s4229_s0 + $0x18] sm:$0xf8]  ;;  %v805_v8 = vor.u32 %v803_v62, %v793_v38 }
  0x6c   :  { %v818_v57 = vsel %vm113_vm1, %v813_v2, %v817_v1  ;;  %v1213_v28 = vmax.f32 %v1209_v4, 0.0 }
  0x6d   :  { %1648 = vmatpush.bf16.msrb.mxu1 %v2952_v36  ;;  %v1047_v33 = vsel %vm519_vm2, %v1042_v60, %v1046_v11  ;;  %v829_v36 = vor.u32 %v827_v15, %v817_v1  ;;  %v708_v60 = vld [vmem:[%s4229_s0 + $0x90] sm:$0x1] }
  0x6e   :  { %v726_v2 = vmax.f32 %v708_v60, 0.0 }
  0x71   :  { %2289 = vmatmul.msk.bf16.gmra.mxu0 %vm262_vm0, %v3384_v34  ;;  %v2941_v34 = vld [vmem:[%s4228_s1 + $0x208] sm:$0xff]  ;;  %1649 = vmatpush.bf16.msrb.mxu1 %v2951_v22  ;;  %v2936_v22 = vld [vmem:[%s4228_s1 + $0x1e0] sm:$0xff] }
  0x72   :  { %2492 = vmatmul.msk.bf16.vlgmr.msra.gmra.mxu2 %vm262_vm0, %v786_v56  ;;  %1394 = vmatpush.bf16.msrb.mxu0 %v2941_v34  ;;  %v2944_v56 = vld [vmem:[%s4228_s1 + $0x220] sm:$0xff]  ;;  %v991_v34 = vld [vmem:[%s4229_s0 + $0x90] sm:$0x3] }
  0x73   :  { %2419 = vmatmul.msk.bf16.gmra.mxu3 %vm262_vm0, %v537_v5  ;;  %v794_v5 = vsel %vm113_vm1, %v789_v46, %v793_v38  ;;  %1428 = vmatpush.bf16.msrb.mxu2 %v2944_v56  ;;  %v995_v3 = vmax.f32 %v991_v34, 0.0  ;;  %v1217_v56 = vpack.c.bf16 %v3072_v16, %v1213_v28  ;;  %v1460_v34 = vld [vmem:[%s4229_s0 + $0x30] sm:$0xff] }
  0x74   :  { %1150 = vmatmul.bf16.vlgmr.msra.gmra.mxu1 %v1038_v42  ;;  %v737_v42 = vpack.c.bf16 %v727_v29, %v727_v29  ;;  %v3695_v28 = vmax.f32 %v1460_v34, 0.0  ;;  %v1465_v34 = vld [vmem:[%s4229_s0 + $0x58] sm:$0xff] }
  0x75   :  { %1650 = vmatpush.bf16.msrb.mxu1 %v2950_v20  ;;  %v2971_v20 = vld [vmem:[%s4228_s1 + $0x2f8] sm:$0xff]  ;;  %v1259_v41 = vshrl.u32 %v1217_v56, 16 }
  0x76   :  { %1395 = vmatpush.bf16.msrb.mxu0 %v2940_v7  ;;  %v831_v0 = vshll.u32 %v737_v42, 16  ;;  %v809_v7 = vrot.slane %v807_v19, 1  ;;  %v1458_v42 = vld [vmem:[%s4229_s0 + $0x20] sm:$0xfc] }
  0x77   :  { %1957 = vmatpush.bf16.msra.mxu2 %v2971_v20  ;;  %v1476_v60 = vmax.f32 %v1458_v42, 0.0  ;;  %v1463_v42 = vld [vmem:[%s4229_s0 + $0x48] sm:$0xff] }
  0x78   :  { %v810_v38 = vsel %vm113_vm1, %v805_v8, %v809_v7 }
  0x79   :  { %1651 = vmatpush.bf16.msrb.mxu1 %v2949_v25 }
  0x7a   :  { %1396 = vmatpush.bf16.msrb.mxu0 %v2939_v30 }
  0x7e   :  { %1397 = vmatpush.bf16.msrb.mxu0 %v2938_v31 }
  0x81   :  { %931 = vmatmul.bf16.vlgmr.msra.gmra.mxu0 %v774_v43  ;;  %v1048_v43 = vrot.slane %v3559_v39, 1 }
  0x82   :  { %2493 = vmatmul.msk.bf16.gmra.mxu2 %vm262_vm0, %v802_v58  ;;  %1398 = vmatpush.bf16.msrb.mxu0 %v2937_v59  ;;  %v999_v58 = vpack.c.bf16 %v995_v3, %v995_v3  ;;  %v1266_v59 = vrot.slane %v795_v21, 1 }
  0x83   :  { %2568 = vmatmul.msk.bf16.vlgmr.msra.gmra.mxu3 %vm262_vm0, %v1041_v44  ;;  %v833_v44 = vrot.slane %v831_v0, 1  ;;  %v1049_v1 = vsel %vm519_vm2, %v1044_v48, %v1048_v43  ;;  %v736_v48 = vpack.c.bf16 %v726_v2, %v726_v2 }
  0x84   :  { %1155 = vmatmul.bf16.gmra.mxu1 %v1043_v37  ;;  %v2948_v37 = vld [vmem:[%s4228_s1 + $0x240] sm:$0xff]  ;;  %v1050_v31 = vrot.slane %v999_v58, 1  ;;  %v1261_v58 = vrot.slane %v1259_v41, 1 }
  0x85   :  { %1652 = vmatpush.bf16.msrb.mxu1 %v2948_v37  ;;  %v834_v12 = vsel %vm113_vm1, %v829_v36, %v833_v44  ;;  %v823_v4 = vshll.u32 %v736_v48, 16  ;;  %v1267_v36 = vrot.slane %v783_v45, 2  ;;  %v1208_v44 = vld [vmem:[%s4229_s0 + $0x10] sm:$0xf8]  ;;  %v2967_v37 = vld [vmem:[%s4228_s1 + $0x2d8] sm:$0xff] }
  0x86   :  { %1399 = vmatpush.bf16.msrb.mxu0 %v2936_v22  ;;  %v1051_v16 = vsel %vm519_vm2, %v1046_v11, %v1050_v31  ;;  %v819_v11 = vshrl.u32 %v3590_v52, 16  ;;  %v2979_v22 = vld [vmem:[%s4228_s1 + $0x338] sm:$0xff]  ;;  %v1712_v52 = vld [vmem:[%s4229_s0 + $0x28] sm:$0xf8] }
  0x87   :  { %v825_v45 = vrot.slane %v823_v4, 1  ;;  %v3707_v31 = vor.u32 %v1267_v36, %v1266_v59  ;;  %v2970_v59 = vld [vmem:[%s4228_s1 + $0x2f0] sm:$0xff] }
  0x88   :  { %v821_v51 = vor.u32 %v819_v11, %v809_v7  ;;  %v2978_v4 = vld [vmem:[%s4228_s1 + $0x330] sm:$0xff]  ;;  %1958 = vmatpush.bf16.msra.mxu2 %v2970_v59 }
  0x89   :  { %2138 = vmatpush.bf16.msra.mxu1 %v2979_v22 }
  0x8a   :  { %1924 = vmatpush.bf16.msra.mxu0 %v2967_v37  ;;  %v826_v7 = vsel %vm113_vm1, %v821_v51, %v825_v45  ;;  %v2982_v37 = vld [vmem:[%s4228_s1 + $0x350] sm:$0xff]  ;;  %v1466_v51 = vld [vmem:[%s4229_s0 + $0x60] sm:$0xff] }
  0x8b   :  { %v1468_v45 = vld [vmem:[%s4229_s0 + $0x70] sm:$0xff] }
  0x8d   :  { %2139 = vmatpush.bf16.msra.mxu1 %v2978_v4 }
  0x91   :  { %936 = vmatmul.bf16.gmra.mxu0 %v794_v5  ;;  %v3613_v35 = vpop.f32.mrf.mxu1  ;;  %v992_v5 = vld [vmem:[%s4229_s0 + $0x98] sm:$0x3]  ;;  %2140 = vmatpush.bf16.msra.mxu1 %v2977_v55 }
  0x92   :  { %2494 = vmatmul.msk.bf16.gmra.mxu2 %vm262_vm0, %v818_v57  ;;  %v2983_v57 = vld [vmem:[%s4228_s1 + $0x358] sm:$0xff] }
  0x93   :  { %2569 = vmatmul.msk.bf16.gmra.mxu3 %vm262_vm0, %v1045_v61  ;;  %v996_v61 = vmax.f32 %v992_v5, 0.0  ;;  %v1494_v5 = vpack.c.bf16 %v3695_v28, %v1476_v60  ;;  %v1483_v60 = vmax.f32 %v1465_v34, 0.0  ;;  %v1486_v34 = vmax.f32 %v1468_v45, 0.0 }
  0x94   :  { %1160 = vmatmul.bf16.gmra.mxu1 %v1047_v33  ;;  %v1262_v33 = vshll.u32 %v1217_v56, 16  ;;  %2171 = vmatpush.bf16.msra.mxu3 %v2983_v57  ;;  %v1459_v57 = vld [vmem:[%s4229_s0 + $0x28] sm:$0xfc] }
  0x95   :  { %v1000_v8 = vpack.c.bf16 %v996_v61, %v996_v61 }
  0x96   :  { %v3619_v32 = vpop.f32.mrf.mxu3  ;;  %v1264_v21 = vrot.slane %v1262_v33, 2  ;;  %v1539_v33 = vrot.slane %v1494_v5, 1 }
  0x97   :  { %v1052_v2 = vrot.slane %v1000_v8, 1 }
  0x98   :  { %2172 = vmatpush.bf16.msra.mxu3 %v2982_v37 }
  0x99   :  { %v3638_v14 = vpop.f32.mrf.mxu1 }
  0x9e   :  { %v3648_v30 = vpop.f32.mrf.mxu3  ;;  %v3653_v46 = vpop.f32.mrf.mxu0 }
  0xa1   :  { %941 = vmatmul.bf16.gmra.mxu0 %v810_v38  ;;  %v3672_v29 = vpop.f32.mrf.mxu1  ;;  %v1212_v38 = vmax.f32 %v1208_v44, 0.0  ;;  %v1477_v44 = vmax.f32 %v1459_v57, 0.0 }
  0xa2   :  { %2495 = vmatmul.msk.bf16.gmra.mxu2 %vm262_vm0, %v834_v12  ;;  %v1265_v12 = vor.u32 %v1264_v21, %v1261_v58  ;;  %v1481_v21 = vmax.f32 %v1463_v42, 0.0  ;;  %v1484_v42 = vmax.f32 %v1466_v51, 0.0 }
  0xa3   :  { %2570 = vmatmul.msk.bf16.gmra.mxu3 %vm262_vm0, %v1049_v1  ;;  %v1216_v48 = vpack.c.bf16 %v3147_v40, %v1212_v38  ;;  %v1461_v40 = vld [vmem:[%s4229_s0 + $0x38] sm:$0xff]  ;;  %v1541_v38 = vsel %vm519_vm2, %v1539_v33, %v3336_v6 }
  0xa4   :  { %1165 = vmatmul.bf16.gmra.mxu1 %v1051_v16  ;;  %v1053_v16 = vsel %vm519_vm2, %v1048_v43, %v1052_v2  ;;  %v1269_v41 = vsel %vm1245_vm3, %v1265_v12, %v3707_v31  ;;  %v2966_v43 = vld [vmem:[%s4228_s1 + $0x2d0] sm:$0xff]  ;;  %v3746_v58 = vmax.f32 %v1461_v40, 0.0  ;;  %v1254_v2 = vrot.slane %v787_v10, 1 }
  0xa5   :  { %v3683_v25 = vpop.f32.mrf.mxu2  ;;  %v1247_v8 = vshrl.u32 %v1216_v48, 16  ;;  %v1250_v36 = vshll.u32 %v1216_v48, 16  ;;  %1925 = vmatpush.bf16.msra.mxu0 %v2966_v43  ;;  %v3772_v33 = vpack.c.bf16 %v1483_v60, %v1481_v21  ;;  %v1274_v40 = vrot.slane %v811_v26, 1  ;;  %v2965_v43 = vld [vmem:[%s4228_s1 + $0x2c8] sm:$0xff] }
  0xa6   :  { %v3685_v0 = vpop.f32.mrf.mxu3  ;;  %v3687_v3 = vpop.f32.mrf.mxu0  ;;  %v1275_v10 = vrot.slane %v799_v24, 2 }
  0xa7   :  { %v1249_v48 = vrot.slane %v1247_v8, 1  ;;  %v1252_v57 = vrot.slane %v1250_v36, 2  ;;  %v1543_v26 = vrot.slane %v3772_v33, 1  ;;  %v3789_v8 = vpack.c.bf16 %v1486_v34, %v1484_v42  ;;  %v1472_v34 = vld [vmem:[%s4229_s0 + $0x90] sm:$0xff] }
  0xa8   :  { %v3787_v24 = vor.u32 %v1275_v10, %v1274_v40  ;;  %v2981_v40 = vld [vmem:[%s4228_s1 + $0x348] sm:$0xff] }
  0xa9   :  { %v3705_v1 = vpop.f32.mrf.mxu1  ;;  %1926 = vmatpush.bf16.msra.mxu0 %v2965_v43  ;;  %v1545_v45 = vrot.slane %v3789_v8, 1  ;;  %2173 = vmatpush.bf16.msra.mxu3 %v2981_v40 }
  0xaa   :  { %v1277_v51 = vsel %vm1245_vm3, %v3707_v31, %v3787_v24  ;;  %v2976_v31 = vld [vmem:[%s4228_s1 + $0x320] sm:$0xff] }
  0xab   :  { %v1546_v42 = vsel %vm519_vm2, %v3336_v6, %v1545_v45  ;;  %2141 = vmatpush.bf16.msra.mxu1 %v2976_v31  ;;  %v1271_v6 = vrot.slane %v791_v17, 2  ;;  %v2975_v17 = vld [vmem:[%s4228_s1 + $0x318] sm:$0xff] }
  0xad   :  { %v3710_v56 = vpop.f32.mrf.mxu2 }
  0xae   :  { %v3712_v20 = vpop.f32.mrf.mxu3  ;;  %v3715_v61 = vpop.f32.mrf.mxu0 }
  0xaf   :  { %2142 = vmatpush.bf16.msra.mxu1 %v2975_v17 }
  0xb1   :  { %946 = vmatmul.bf16.gmra.mxu0 %v826_v7  ;;  %v3751_v22 = vpop.f32.mrf.mxu1 }
  0xb2   :  { %2644 = vmatmul.msk.bf16.vlgmr.msrb.gmra.mxu2 %vm262_vm0, %v1269_v41  ;;  %v1495_v41 = vpack.c.bf16 %v3746_v58, %v1477_v44 }
  0xb3   :  { %2571 = vmatmul.msk.bf16.gmra.mxu3 %vm262_vm0, %v1053_v16  ;;  %v1255_v16 = vrot.slane %v771_v63, 2  ;;  %v1253_v63 = vor.u32 %v1252_v57, %v1249_v48  ;;  %v1469_v48 = vld [vmem:[%s4229_s0 + $0x78] sm:$0xff]  ;;  %v2969_v57 = vld [vmem:[%s4228_s1 + $0x2e8] sm:$0xff] }
  0xb4   :  { %1653 = vmatmul.bf16.vlgmr.msrb.gmra.mxu1 %v1541_v38  ;;  %v1542_v4 = vrot.slane %v1495_v41, 1  ;;  %v1487_v41 = vmax.f32 %v1469_v48, 0.0  ;;  %1959 = vmatpush.bf16.msra.mxu2 %v2969_v57  ;;  %v1283_v48 = vrot.slane %v815_v18, 2 }
  0xb5   :  { %v3763_v12 = vpop.f32.mrf.mxu2  ;;  %v3784_v59 = vor.u32 %v1255_v16, %v1254_v2  ;;  %v1467_v2 = vld [vmem:[%s4229_s0 + $0x68] sm:$0xff] }
  0xb6   :  { %v3765_v5 = vpop.f32.mrf.mxu3  ;;  %v3767_v7 = vpop.f32.mrf.mxu0  ;;  %v1544_v38 = vsel %vm519_vm2, %v1542_v4, %v1543_v26  ;;  %v1485_v16 = vmax.f32 %v1467_v2, 0.0  ;;  %v1282_v2 = vrot.slane %v827_v15, 1 }
  0xb7   :  { %v1257_v60 = vsel %vm1245_vm3, %v1253_v63, %v3784_v59  ;;  %v1270_v63 = vrot.slane %v803_v62, 1  ;;  %v1490_v62 = vmax.f32 %v1472_v34, 0.0  ;;  %v1473_v34 = vld [vmem:[%s4229_s0 + $0x98] sm:$0xff] }
  0xb9   :  { %v637_v50 = vpop.f32.mrf.mxu1  ;;  %v3860_v15 = vor.u32 %v1271_v6, %v1270_v63  ;;  %v2962_v63 = vld [vmem:[%s4228_s1 + $0x2b0] sm:$0xff] }
  0xba   :  { %v2974_v6 = vld [vmem:[%s4228_s1 + $0x310] sm:$0xff] }
  0xbb   :  { %2143 = vmatpush.bf16.msra.mxu1 %v2974_v6  ;;  %v1475_v6 = vld [vmem:[%s4229_s0 + $0xa8] sm:$0x3] }
  0xbd   :  { %v3791_v36 = vpop.f32.mrf.mxu2 }
  0xbe   :  { %v3793_v44 = vpop.f32.mrf.mxu3  ;;  %v294_v21 = vpop.f32.mrf.mxu0 }
  0xbf   :  { %v324_v37 = vadd.f32 %v3613_v35, %v294_v21  ;;  %v2964_v35 = vld [vmem:[%s4228_s1 + $0x2c0] sm:$0xff] }
  0xc0   :  { %1927 = vmatpush.bf16.msra.mxu0 %v2964_v35  ;;  %v3865_v35 = vor.u32 %v1283_v48, %v1282_v2  ;;  %v1474_v2 = vld [vmem:[%s4229_s0 + $0xa0] sm:$0x3] }
  0xc1   :  { %1400 = vmatmul.bf16.vlgmr.msrb.gmra.mxu0 %v1257_v60  ;;  %v3825_v10 = vpop.f32.mrf.mxu1  ;;  %v1492_v13 = vmax.f32 %v1474_v2, 0.0  ;;  %v2960_v2 = vld [vmem:[%s4228_s1 + $0x2a0] sm:$0xff] }
  0xc2   :  { %2645 = vmatmul.msk.bf16.gmra.mxu2 %vm262_vm0, %v1277_v51 }
  0xc3   :  { %2720 = vmatmul.msk.bf16.vlgmr.msrb.gmra.mxu3 %vm262_vm0, %v1544_v38  ;;  %v3841_v38 = vpack.c.bf16 %v1487_v41, %v1485_v16 }
  0xc4   :  { %1658 = vmatmul.bf16.gmra.mxu1 %v1546_v42  ;;  %1928 = vmatpush.bf16.msra.mxu0 %v2963_v53  ;;  %v1273_v42 = vsel %vm1245_vm3, %v3784_v59, %v3860_v15  ;;  %v1279_v53 = vrot.slane %v807_v19, 2 }
  0xc5   :  { %v433_v43 = vpop.f32.mrf.mxu2  ;;  %v1547_v18 = vrot.slane %v3841_v38, 1 }
  0xc6   :  { %v664_v55 = vpop.f32.mrf.mxu3  ;;  %v434_v4 = vadd.f32 %v433_v43, %v324_v37  ;;  %v296_v60 = vpop.f32.mrf.mxu0 }
  0xc7   :  { %v3837_v21 = vadd.f32 %v664_v55, %v3751_v22  ;;  %v326_v51 = vadd.f32 %v3638_v14, %v296_v60  ;;  %v1211_v22 = vld [vmem:[%s4229_s0 + $0x98] sm:$0x7]  ;;  %v1548_v47 = vsel %vm519_vm2, %v1543_v26, %v1547_v18 }
  0xc8   :  { %v3852_v37 = vadd.f32 %v3685_v0, %v434_v4  ;;  %v1215_v39 = vmax.f32 %v1211_v22, 0.0  ;;  %v3869_v0 = vpack.c.bf16 %v1490_v62, %v724_v23  ;;  %v1285_v23 = vsel %vm1245_vm3, %v3787_v24, %v3865_v35  ;;  %1929 = vmatpush.bf16.msra.mxu0 %v2962_v63  ;;  %v2968_v24 = vld [vmem:[%s4228_s1 + $0x2e0] sm:$0xff] }
  0xc9   :  { %v3863_v14 = vpop.f32.mrf.mxu1  ;;  %v1278_v22 = vrot.slane %v819_v11, 1  ;;  %1960 = vmatpush.bf16.msra.mxu2 %v2968_v24  ;;  %v2973_v11 = vld [vmem:[%s4228_s1 + $0x308] sm:$0xff] }
  0xca   :  { %v1219_v43 = vpack.c.bf16 %v1215_v39, %v1215_v39  ;;  %2144 = vmatpush.bf16.msra.mxu1 %v2973_v11 }
  0xcc   :  { %v1296_v26 = vshrl.u32 %v1219_v43, 16  ;;  %v1299_v4 = vshll.u32 %v1219_v43, 16  ;;  %v1716_v43 = vmax.f32 %v1712_v52, 0.0 }
  0xcd   :  { %v435_v57 = vpop.f32.mrf.mxu2 }
  0xce   :  { %v666_v31 = vpop.f32.mrf.mxu3  ;;  %v436_v16 = vadd.f32 %v435_v57, %v326_v51  ;;  %v299_v40 = vpop.f32.mrf.mxu0  ;;  %v2980_v51 = vld [vmem:[%s4228_s1 + $0x340] sm:$0xff] }
  0xcf   :  { %v3871_v41 = vadd.f32 %v666_v31, %v637_v50  ;;  %v329_v55 = vadd.f32 %v3672_v29, %v299_v40  ;;  %v1549_v50 = vrot.slane %v3869_v0, 1  ;;  %v1491_v29 = vmax.f32 %v1473_v34, 0.0  ;;  %2174 = vmatpush.bf16.msra.mxu3 %v2980_v51 }
  0xd0   :  { %v3890_v59 = vadd.f32 %v3712_v20, %v436_v16  ;;  %v1298_v16 = vrot.slane %v1296_v26, 1  ;;  %v1301_v40 = vrot.slane %v1299_v4, 2  ;;  %v3943_v34 = vor.u32 %v1279_v53, %v1278_v22 }
  0xd1   :  { %1405 = vmatmul.bf16.gmra.mxu0 %v1273_v42  ;;  %v3897_v60 = vpop.f32.mrf.mxu1  ;;  %v1550_v20 = vsel %vm519_vm2, %v1545_v45, %v1549_v50  ;;  %v1210_v45 = vld [vmem:[%s4229_s0 + $0x90] sm:$0x7]  ;;  %v3925_v17 = vpack.c.bf16 %v1491_v29, %v725_v27  ;;  %v2961_v42 = vld [vmem:[%s4228_s1 + $0x2a8] sm:$0xff]  ;;  %v2972_v29 = vld [vmem:[%s4228_s1 + $0x300] sm:$0xff]  ;;  %v1720_v51 = vpack.c.bf16 %v3746_v58, %v1716_v43 }
  0xd2   :  { %2646 = vmatmul.msk.bf16.gmra.mxu2 %vm262_vm0, %v1285_v23  ;;  %v1214_v27 = vmax.f32 %v1210_v45, 0.0  ;;  %1930 = vmatpush.bf16.msra.mxu0 %v2961_v42  ;;  %v1281_v24 = vsel %vm1245_vm3, %v3860_v15, %v3943_v34 }
  0xd3   :  { %2721 = vmatmul.msk.bf16.gmra.mxu3 %vm262_vm0, %v1548_v47  ;;  %v1991_v47 = vld [vmem:[%s4229_s0 + $0x28] sm:$0xf0]  ;;  %2145 = vmatpush.bf16.msra.mxu1 %v2972_v29 }
  0xd4   :  { %1663 = vmatmul.bf16.gmra.mxu1 %v1550_v20  ;;  %v1218_v63 = vpack.c.bf16 %v1214_v27, %v1214_v27  ;;  %v1995_v26 = vmax.f32 %v1991_v47, 0.0  ;;  %v1769_v27 = vshll.u32 %v1720_v51, 16 }
  0xd5   :  { %v438_v48 = vpop.f32.mrf.mxu2 }
  0xd6   :  { %v669_v62 = vpop.f32.mrf.mxu3  ;;  %v439_v39 = vadd.f32 %v438_v48, %v329_v55  ;;  %v301_v31 = vpop.f32.mrf.mxu0  ;;  %v1551_v55 = vrot.slane %v3925_v17, 1  ;;  %1931 = vmatpush.bf16.msra.mxu0 %v2960_v2  ;;  %v1999_v52 = vpack.c.bf16 %v3746_v58, %v1995_v26 }
  0xd7   :  { %v3928_v57 = vadd.f32 %v669_v62, %v3825_v10  ;;  %v331_v19 = vadd.f32 %v3705_v1, %v301_v31  ;;  %v1302_v1 = vor.u32 %v1301_v40, %v1298_v16  ;;  %v1287_v31 = vshrl.u32 %v1218_v63, 16 }
  0xd8   :  { %v3938_v10 = vadd.f32 %v3765_v5, %v439_v39  ;;  %v1502_v5 = vpack.c.bf16 %v1492_v13, %v1492_v13  ;;  %v1552_v15 = vsel %vm519_vm2, %v1547_v18, %v1551_v55  ;;  %v1290_v16 = vshll.u32 %v1218_v63, 16 }
  0xd9   :  { %v3949_v23 = vpop.f32.mrf.mxu1  ;;  %v1303_v22 = vsel %vm1245_vm3, %v3865_v35, %v1302_v1  ;;  %v1766_v13 = vshrl.u32 %v1720_v51, 16  ;;  %v1774_v35 = vshrl.u32 %v3772_v33, 16  ;;  %v1289_v42 = vrot.slane %v1287_v31, 1 }
  0xda   :  { %v1553_v39 = vrot.slane %v1502_v5, 1  ;;  %v1292_v43 = vrot.slane %v1290_v16, 2 }
  0xdb   :  { %v1768_v29 = vrot.slane %v1766_v13, 1  ;;  %v1776_v26 = vrot.slane %v1774_v35, 1 }
  0xdc   :  { %v1554_v58 = vsel %vm519_vm2, %v1549_v50, %v1553_v39 }
  0xdd   :  { %v440_v4 = vpop.f32.mrf.mxu2 }
  0xde   :  { %v671_v20 = vpop.f32.mrf.mxu3  ;;  %v441_v45 = vadd.f32 %v440_v4, %v331_v19  ;;  %v313_v62 = vpop.f32.mrf.mxu0  ;;  %v2036_v19 = vrot.slane %v3772_v33, 2 }
  0xdf   :  { %v3965_v48 = vadd.f32 %v671_v20, %v3863_v14  ;;  %v314_v53 = vadd.f32 %v313_v62, %v3653_v46  ;;  %v1493_v14 = vmax.f32 %v1475_v6, 0.0  ;;  %v1777_v46 = vshll.u32 %v3772_v33, 16  ;;  %v1990_v33 = vld [vmem:[%s4229_s0 + $0x20] sm:$0xf0] }
  0xe0   :  { %v3976_v40 = vadd.f32 %v3793_v44, %v441_v45  ;;  %v2035_v44 = vrot.slane %v1999_v52, 2  ;;  %v1771_v6 = vrot.slane %v1769_v27, 2  ;;  %v1994_v45 = vmax.f32 %v1990_v33, 0.0 }
  0xe1   :  { %1410 = vmatmul.bf16.gmra.mxu0 %v1281_v24  ;;  %v424_v18 = vadd.f32 %v3683_v25, %v314_v53  ;;  %v3985_v11 = vpop.f32.mrf.mxu1  ;;  %v1711_v25 = vld [vmem:[%s4229_s0 + $0x20] sm:$0xf8]  ;;  %v1503_v63 = vpack.c.bf16 %v1493_v14, %v1493_v14  ;;  %v1779_v50 = vrot.slane %v1777_v46, 2  ;;  %v1293_v53 = vor.u32 %v1292_v43, %v1289_v42 }
  0xe2   :  { %2647 = vmatmul.msk.bf16.gmra.mxu2 %vm262_vm0, %v1303_v22  ;;  %v3997_v1 = vsel %vm2031_vm4, %v2035_v44, %v2036_v19  ;;  %v1715_v51 = vmax.f32 %v1711_v25, 0.0  ;;  %v1772_v31 = vor.u32 %v1771_v6, %v1768_v29  ;;  %v1998_v52 = vpack.c.bf16 %v3695_v28, %v1994_v45 }
  0xe3   :  { %2722 = vmatmul.msk.bf16.gmra.mxu3 %vm262_vm0, %v1552_v15  ;;  %v1555_v39 = vrot.slane %v1503_v63, 1  ;;  %v4008_v16 = vor.u32 %v1779_v50, %v1776_v26  ;;  %v2040_v25 = vrot.slane %v3841_v38, 2  ;;  %v1792_v43 = vshrl.u32 %v3841_v38, 16 }
  0xe4   :  { %1668 = vmatmul.bf16.gmra.mxu1 %v1554_v58  ;;  %v2033_v58 = vrot.slane %v3247_v49, 2  ;;  %v1762_v26 = vrot.slane %v142_v54, 2  ;;  %v1786_v6 = vshll.u32 %v3789_v8, 16  ;;  %v1714_v49 = vld [vmem:[%s4229_s0 + $0xa8] sm:$0x7] }
  0xe5   :  { %v452_v47 = vpop.f32.mrf.mxu2  ;;  %v1781_v46 = vsel %vm1245_vm3, %v1772_v31, %v4008_v16  ;;  %v4032_v33 = vsel %vm2031_vm4, %v2036_v19, %v2040_v25  ;;  %v1759_v19 = vrot.slane %v154_v9, 1  ;;  %v1794_v50 = vrot.slane %v1792_v43, 1 }
  0xe6   :  { %v674_v5 = vpop.f32.mrf.mxu3  ;;  %v453_v4 = vadd.f32 %v452_v47, %v424_v18  ;;  %v315_v24 = vpop.f32.mrf.mxu0  ;;  %v1801_v31 = vshrl.u32 %v3869_v0, 16 }
  0xe7   :  { %v675_v20 = vadd.f32 %v674_v5, %v3897_v60  ;;  %v316_v2 = vadd.f32 %v315_v24, %v3687_v3  ;;  %v1719_v60 = vpack.c.bf16 %v3695_v28, %v1715_v51  ;;  %v2032_v28 = vrot.slane %v1998_v52, 2 }
  0xe8   :  { %v4002_v62 = vadd.f32 %v3837_v21, %v453_v4  ;;  %v1294_v21 = vsel %vm1245_vm3, %v3943_v34, %v1293_v53  ;;  %v1783_v24 = vshrl.u32 %v3789_v8, 16  ;;  %v1763_v45 = vor.u32 %v1762_v26, %v1759_v19 }
  0xe9   :  { %v4005_v15 = vadd.f32 %v675_v20, %v3852_v37  ;;  %v426_v22 = vadd.f32 %v3710_v56, %v316_v2  ;;  %v652_v14 = vpop.f32.mrf.mxu1  ;;  %v1556_v37 = vsel %vm519_vm2, %v1551_v55, %v1555_v39  ;;  %v1749_v27 = vshrl.u32 %v1719_v60, 16 }
  0xea   :  { %v1752_v42 = vshll.u32 %v1719_v60, 16  ;;  %v1788_v53 = vrot.slane %v1786_v6, 2  ;;  %v1804_v60 = vshll.u32 %v3869_v0, 16  ;;  %v2038_v52 = vrot.slane %v3789_v8, 2 }
  0xeb   :  { %v1718_v19 = vmax.f32 %v1714_v49, 0.0 }
  0xec   :  { %v1754_v5 = vrot.slane %v1752_v42, 2 }
  0xed   :  { %v454_v3 = vpop.f32.mrf.mxu2  ;;  %v1722_v6 = vpack.c.bf16 %v1718_v19, %v1718_v19 }
  0xee   :  { %v676_v18 = vpop.f32.mrf.mxu3  ;;  %v455_v56 = vadd.f32 %v454_v3, %v426_v22  ;;  %v318_v35 = vpop.f32.mrf.mxu0  ;;  %v1785_v22 = vrot.slane %v1783_v24, 1 }
  0xef   :  { %v677_v13 = vadd.f32 %v676_v18, %v3949_v23  ;;  %v319_v44 = vadd.f32 %v318_v35, %v3715_v61  ;;  %v1795_v61 = vshll.u32 %v3841_v38, 16  ;;  %v1803_v18 = vrot.slane %v1801_v31, 1 }
  0xf0   :  { %v4024_v34 = vadd.f32 %v3871_v41, %v455_v56  ;;  %v1789_v35 = vor.u32 %v1788_v53, %v1785_v22  ;;  %v1831_v22 = vshll.u32 %v1722_v6, 16 }
  0xf1   :  { %v4027_v55 = vadd.f32 %v677_v13, %v3890_v59  ;;  %v429_v23 = vadd.f32 %v3763_v12, %v319_v44  ;;  %1415 = vmatmul.bf16.gmra.mxu0 %v1294_v21  ;;  %v1151_v47 = vpop.f32.mrf.mxu1  ;;  %v2034_v59 = vsel %vm2031_vm4, %v2032_v28, %v2033_v58  ;;  %v1751_v12 = vrot.slane %v1749_v27, 1 }
  0xf2   :  { %2796 = vmatmul.msk.bf16.vlgmr.msra.gmra.mxu2 %vm262_vm0, %v1781_v46  ;;  %v1797_v20 = vrot.slane %v1795_v61, 2  ;;  %v1806_v21 = vrot.slane %v1804_v60, 2  ;;  %v1833_v60 = vrot.slane %v1831_v22, 2 }
  0xf3   :  { %2723 = vmatmul.msk.bf16.gmra.mxu3 %vm262_vm0, %v1556_v37  ;;  %v458_v41 = vadd.f32 %v3619_v32, %v429_v23  ;;  %v1755_v2 = vor.u32 %v1754_v5, %v1751_v12  ;;  %v1813_v23 = vshll.u32 %v3925_v17, 16 }
  0xf4   :  { %2146 = vmatmul.bf16.vlgmr.msra.gmra.mxu1 %v2034_v59  ;;  %v4070_v27 = vor.u32 %v1806_v21, %v1803_v18 }
  0xf5   :  { %v961_v29 = vpop.f32.mrf.mxu2  ;;  %v4046_v38 = vadd.f32 %v3928_v57, %v458_v41  ;;  %v1798_v57 = vor.u32 %v1797_v20, %v1794_v50  ;;  %v1815_v5 = vrot.slane %v1813_v23, 2  ;;  %v1993_v23 = vld [vmem:[%s4229_s0 + $0xa8] sm:$0xf] }
  0xf6   :  { %v679_v63 = vpop.f32.mrf.mxu3  ;;  %v320_v4 = vpop.f32.mrf.mxu0  ;;  %v4079_v28 = vsel %vm1245_vm3, %v1789_v35, %v4070_v27 }
  0xf7   :  { %v680_v32 = vadd.f32 %v679_v63, %v3985_v11  ;;  %v321_v51 = vadd.f32 %v320_v4, %v3767_v7  ;;  %v1799_v13 = vsel %vm1245_vm3, %v4008_v16, %v1798_v57  ;;  %v1790_v4 = vsel %vm1245_vm3, %v1763_v45, %v1789_v35 }
  0xf9   :  { %v4053_v9 = vadd.f32 %v680_v32, %v3938_v10  ;;  %v431_v54 = vadd.f32 %v3791_v36, %v321_v51  ;;  %v1153_v39 = vpop.f32.mrf.mxu1  ;;  %v2042_v36 = vrot.slane %v3869_v0, 2 }
  0xfb   :  { %v460_v11 = vadd.f32 %v3648_v30, %v431_v54  ;;  %v1764_v30 = vsel %vm1245_vm3, %v1755_v2, %v1763_v45  ;;  %v2043_v8 = vsel %vm2031_vm4, %v2038_v52, %v2042_v36  ;;  %v1828_v2 = vshrl.u32 %v1722_v6, 16  ;;  %v1992_v45 = vld [vmem:[%s4229_s0 + $0xa0] sm:$0xf] }
  0xfd   :  { %v963_v3 = vpop.f32.mrf.mxu2  ;;  %v4061_v10 = vadd.f32 %v3965_v48, %v460_v11  ;;  %v2044_v48 = vrot.slane %v3925_v17, 2 }
  0xfe   :  { %v681_v7 = vpop.f32.mrf.mxu3  ;;  %v932_v56 = vpop.f32.mrf.mxu0 }
  0xff   :  { %v682_v37 = vadd.f32 %v681_v7, %v652_v14  ;;  %v962_v46 = vadd.f32 %v961_v29, %v932_v56  ;;  %v4084_v16 = vsel %vm2031_vm4, %v2040_v25, %v2044_v48 }
 0x101   :  { %v4074_v44 = vadd.f32 %v682_v37, %v3976_v40  ;;  %v981_v14 = vadd.f32 %v962_v46, %v4002_v62  ;;  %1932 = vmatmul.bf16.vlgmr.msra.gmra.mxu0 %v1764_v30  ;;  %v1156_v42 = vpop.f32.mrf.mxu1  ;;  %v2039_v40 = vsel %vm2031_vm4, %v2033_v58, %v2038_v52  ;;  %v1810_v62 = vshrl.u32 %v3925_v17, 16 }
 0x102   :  { %2797 = vmatmul.msk.bf16.gmra.mxu2 %vm262_vm0, %v1799_v13  ;;  %v1996_v52 = vmax.f32 %v1992_v45, 0.0 }
 0x103   :  { %2872 = vmatmul.msk.bf16.vlgmr.msra.gmra.mxu3 %vm262_vm0, %v3997_v1  ;;  %v1812_v12 = vrot.slane %v1810_v62, 1 }
 0x104   :  { %2151 = vmatmul.bf16.gmra.mxu1 %v2039_v40  ;;  %v2000_v56 = vpack.c.bf16 %v1996_v52, %v1996_v52 }
 0x105   :  { %v966_v61 = vpop.f32.mrf.mxu2  ;;  %v1816_v29 = vor.u32 %v1815_v5, %v1812_v12 }
 0x106   :  { %v1180_v43 = vpop.f32.mrf.mxu3  ;;  %v934_v59 = vpop.f32.mrf.mxu0  ;;  %v2046_v40 = vrot.slane %v2000_v56, 2 }
 0x107   :  { %v1181_v41 = vadd.f32 %v1180_v43, %v1151_v47  ;;  %v964_v25 = vadd.f32 %v963_v3, %v934_v59  ;;  %v1817_v24 = vsel %vm1245_vm3, %v1798_v57, %v1816_v29 }
 0x108   :  { %v2047_v59 = vsel %vm2031_vm4, %v2042_v36, %v2046_v40 }
 0x109   :  { %v4094_v1 = vadd.f32 %v1181_v41, %v981_v14  ;;  %v982_v58 = vadd.f32 %v964_v25, %v4024_v34  ;;  %v1158_v63 = vpop.f32.mrf.mxu1  ;;  %v1997_v25 = vmax.f32 %v1993_v23, 0.0 }
 0x10d   :  { %v968_v50 = vpop.f32.mrf.mxu2 }
 0x10e   :  { %v1182_v26 = vpop.f32.mrf.mxu3  ;;  %v937_v47 = vpop.f32.mrf.mxu0 }
 0x10f   :  { %v1183_v32 = vadd.f32 %v1182_v26, %v1153_v39  ;;  %v967_v20 = vadd.f32 %v966_v61, %v937_v47 }
 0x111   :  { %v4102_v51 = vadd.f32 %v1183_v32, %v982_v58  ;;  %v983_v54 = vadd.f32 %v967_v20, %v4046_v38  ;;  %1937 = vmatmul.bf16.gmra.mxu0 %v1790_v4  ;;  %v1161_v34 = vpop.f32.mrf.mxu1  ;;  %v1830_v38 = vrot.slane %v1828_v2, 1 }
 0x112   :  { %2798 = vmatmul.msk.bf16.gmra.mxu2 %vm262_vm0, %v1817_v24 }
 0x113   :  { %2873 = vmatmul.msk.bf16.gmra.mxu3 %vm262_vm0, %v4032_v33  ;;  %v1713_v33 = vld [vmem:[%s4229_s0 + $0xa0] sm:$0x7]  ;;  %v1834_v37 = vor.u32 %v1833_v60, %v1830_v38 }
 0x114   :  { %2156 = vmatmul.bf16.gmra.mxu1 %v2043_v8  ;;  %v1717_v18 = vmax.f32 %v1713_v33, 0.0 }
 0x115   :  { %v971_v57 = vpop.f32.mrf.mxu2 }
 0x116   :  { %v1185_v53 = vpop.f32.mrf.mxu3  ;;  %v939_v39 = vpop.f32.mrf.mxu0  ;;  %v1721_v8 = vpack.c.bf16 %v1717_v18, %v1717_v18 }
 0x117   :  { %v1186_v11 = vadd.f32 %v1185_v53, %v1156_v42  ;;  %v969_v31 = vadd.f32 %v968_v50, %v939_v39  ;;  %v1835_v42 = vsel %vm1245_vm3, %v1816_v29, %v1834_v37  ;;  %v2001_v29 = vpack.c.bf16 %v1997_v25, %v1997_v25 }
 0x118   :  { %v1819_v43 = vshrl.u32 %v1721_v8, 16  ;;  %v1822_v61 = vshll.u32 %v1721_v8, 16 }
 0x119   :  { %v4114_v7 = vadd.f32 %v1186_v11, %v983_v54  ;;  %v984_v3 = vadd.f32 %v969_v31, %v4061_v10  ;;  %v1163_v21 = vpop.f32.mrf.mxu1  ;;  %v2048_v50 = vrot.slane %v2001_v29, 2 }
 0x11b   :  { %v2049_v6 = vsel %vm2031_vm4, %v2044_v48, %v2048_v50 }
 0x11d   :  { %v973_v13 = vpop.f32.mrf.mxu2 }
 0x11e   :  { %v1187_v30 = vpop.f32.mrf.mxu3  ;;  %v942_v46 = vpop.f32.mrf.mxu0 }
 0x11f   :  { %v1188_v35 = vadd.f32 %v1187_v30, %v1158_v63  ;;  %v972_v14 = vadd.f32 %v971_v57, %v942_v46 }
 0x121   :  { %v4118_v62 = vadd.f32 %v1188_v35, %v984_v3  ;;  %v985_v10 = vadd.f32 %v972_v14, %v4005_v15  ;;  %1942 = vmatmul.bf16.gmra.mxu0 %v4079_v28  ;;  %v1166_v41 = vpop.f32.mrf.mxu1  ;;  %v1821_v15 = vrot.slane %v1819_v43, 1  ;;  %v1824_v28 = vrot.slane %v1822_v61, 2 }
 0x122   :  { %2799 = vmatmul.msk.bf16.gmra.mxu2 %vm262_vm0, %v1835_v42 }
 0x123   :  { %2874 = vmatmul.msk.bf16.gmra.mxu3 %vm262_vm0, %v4084_v16  ;;  %v1825_v26 = vor.u32 %v1824_v28, %v1821_v15 }
 0x124   :  { %2161 = vmatmul.bf16.gmra.mxu1 %v2047_v59 }
 0x125   :  { %v976_v5 = vpop.f32.mrf.mxu2  ;;  %v1826_v20 = vsel %vm1245_vm3, %v4070_v27, %v1825_v26 }
 0x126   :  { %v1190_v12 = vpop.f32.mrf.mxu3  ;;  %v944_v58 = vpop.f32.mrf.mxu0 }
 0x127   :  { %v1191_v49 = vadd.f32 %v1190_v12, %v1161_v34  ;;  %v974_v63 = vadd.f32 %v973_v13, %v944_v58 }
 0x129   :  { %v4131_v16 = vadd.f32 %v1191_v49, %v985_v10  ;;  %v986_v19 = vadd.f32 %v974_v63, %v4027_v55  ;;  %v1168_v32 = vpop.f32.mrf.mxu1 }
 0x12d   :  { %v978_v47 = vpop.f32.mrf.mxu2 }
 0x12e   :  { %v1192_v0 = vpop.f32.mrf.mxu3  ;;  %v947_v4 = vpop.f32.mrf.mxu0 }
 0x12f   :  { %v1193_v36 = vadd.f32 %v1192_v0, %v1163_v21  ;;  %v977_v24 = vadd.f32 %v976_v5, %v947_v4 }
 0x131   :  { %v4139_v54 = vadd.f32 %v1193_v36, %v986_v19  ;;  %v987_v34 = vadd.f32 %v977_v24, %v4053_v9  ;;  %1947 = vmatmul.bf16.gmra.mxu0 %v1826_v20  ;;  %v1654_v55 = vpop.f32.mrf.mxu1 }
 0x133   :  { %2875 = vmatmul.msk.bf16.gmra.mxu3 %vm262_vm0, %v2049_v6 }
 0x135   :  { %v1430_v22 = vpop.f32.mrf.mxu2 }
 0x136   :  { %v1195_v2 = vpop.f32.mrf.mxu3  ;;  %v949_v53 = vpop.f32.mrf.mxu0 }
 0x137   :  { %v1196_v45 = vadd.f32 %v1195_v2, %v1166_v41  ;;  %v979_v57 = vadd.f32 %v978_v47, %v949_v53 }
 0x139   :  { %v4143_v11 = vadd.f32 %v1196_v45, %v987_v34  ;;  %v988_v27 = vadd.f32 %v979_v57, %v4074_v44  ;;  %v1656_v17 = vpop.f32.mrf.mxu1 }
 0x13d   :  { %v1432_v48 = vpop.f32.mrf.mxu2 }
 0x13e   :  { %v1197_v39 = vpop.f32.mrf.mxu3  ;;  %v1401_v38 = vpop.f32.mrf.mxu0 }
 0x13f   :  { %v1198_v31 = vadd.f32 %v1197_v39, %v1168_v32  ;;  %v1431_v63 = vadd.f32 %v1430_v22, %v1401_v38 }
 0x141   :  { %v4146_v60 = vadd.f32 %v1198_v31, %v988_v27  ;;  %v1659_v9 = vpop.f32.mrf.mxu1  ;;  %v1450_v50 = vadd.f32 %v1431_v63, %v4094_v1 }
 0x145   :  { %v1435_v33 = vpop.f32.mrf.mxu2 }
 0x146   :  { %v1683_v52 = vpop.f32.mrf.mxu3  ;;  %v1403_v3 = vpop.f32.mrf.mxu0 }
 0x147   :  { %v1684_v19 = vadd.f32 %v1683_v52, %v1654_v55  ;;  %v1433_v36 = vadd.f32 %v1432_v48, %v1403_v3 }
 0x149   :  { %v4148_v18 = vpop.f32.mrf.mxu1  ;;  %v1703_v0 = vadd.f32 %v1684_v19, %v1450_v50  ;;  %v1451_v45 = vadd.f32 %v1433_v36, %v4102_v51 }
 0x14d   :  { %v1437_v37 = vpop.f32.mrf.mxu2 }
 0x14e   :  { %v1685_v21 = vpop.f32.mrf.mxu3  ;;  %v1406_v56 = vpop.f32.mrf.mxu0 }
 0x14f   :  { %v1686_v34 = vadd.f32 %v1685_v21, %v1656_v17  ;;  %v1436_v57 = vadd.f32 %v1435_v33, %v1406_v56 }
 0x151   :  { %v4150_v30 = vpop.f32.mrf.mxu1  ;;  %v1704_v53 = vadd.f32 %v1686_v34, %v1451_v45  ;;  %v1452_v17 = vadd.f32 %v1436_v57, %v4114_v7 }
 0x155   :  { %v4152_v44 = vpop.f32.mrf.mxu2 }
 0x156   :  { %v1688_v13 = vpop.f32.mrf.mxu3  ;;  %v1408_v35 = vpop.f32.mrf.mxu0 }
 0x157   :  { %v1689_v31 = vadd.f32 %v1688_v13, %v1659_v9 }
 0x159   :  { %v4154_v46 = vpop.f32.mrf.mxu1  ;;  %v1705_v3 = vadd.f32 %v1689_v31, %v1452_v17 }
 0x15d   :  { %v4156_v14 = vpop.f32.mrf.mxu2 }
 0x15e   :  { %v1690_v8 = vpop.f32.mrf.mxu3  ;;  %v1411_v42 = vpop.f32.mrf.mxu0 }
 0x15f   :  { %v1691_v56 = vadd.f32 %v1690_v8, %v4148_v18  ;;  %v1441_v50 = vadd.f32 %v4152_v44, %v1411_v42 }
 0x161   :  { %v4158_v40 = vpop.f32.mrf.mxu1 }
 0x165   :  { %v4162_v10 = vpop.f32.mrf.mxu2 }
 0x166   :  { %v4160_v23 = vpop.f32.mrf.mxu3  ;;  %v4164_v43 = vpop.f32.mrf.mxu0 }
 0x167   :  { %v1694_v18 = vadd.f32 %v4160_v23, %v4150_v30  ;;  %v1443_v44 = vadd.f32 %v4156_v14, %v4164_v43 }
 0x169   :  { %v4166_v61 = vpop.f32.mrf.mxu1 }
 0x16d   :  { %v4170_v59 = vpop.f32.mrf.mxu2 }
 0x16e   :  { %v4168_v41 = vpop.f32.mrf.mxu3  ;;  %v4172_v25 = vpop.f32.mrf.mxu0 }
 0x16f   :  { %v1696_v30 = vadd.f32 %v4168_v41, %v4154_v46  ;;  %v1446_v14 = vadd.f32 %v4162_v10, %v4172_v25 }
 0x171   :  { %v2147_v58 = vpop.f32.mrf.mxu1 }
 0x175   :  { %v1962_v5 = vpop.f32.mrf.mxu2 }
 0x176   :  { %v4174_v12 = vpop.f32.mrf.mxu3  ;;  %v4176_v49 = vpop.f32.mrf.mxu0 }
 0x177   :  { %v1699_v46 = vadd.f32 %v4174_v12, %v4158_v40  ;;  %v1448_v10 = vadd.f32 %v4170_v59, %v4176_v49 }
 0x179   :  { %v2149_v26 = vpop.f32.mrf.mxu1 }
 0x17d   :  { %v1964_v28 = vpop.f32.mrf.mxu2 }
 0x17e   :  { %v4178_v15 = vpop.f32.mrf.mxu3  ;;  %v1933_v29 = vpop.f32.mrf.mxu0 }
 0x17f   :  { %v1963_v32 = vadd.f32 %v1962_v5, %v1933_v29  ;;  %v1701_v40 = vadd.f32 %v4178_v15, %v4166_v61 }
 0x181   :  { %v1982_v4 = vadd.f32 %v1963_v32, %v1703_v0  ;;  %v2152_v22 = vpop.f32.mrf.mxu1 }
 0x185   :  { %v1967_v6 = vpop.f32.mrf.mxu2 }
 0x186   :  { %v2176_v47 = vpop.f32.mrf.mxu3  ;;  %v1935_v24 = vpop.f32.mrf.mxu0 }
 0x187   :  { %v2177_v20 = vadd.f32 %v2176_v47, %v2147_v58  ;;  %v1965_v55 = vadd.f32 %v1964_v28, %v1935_v24  ;;  %v1438_v58 = vadd.f32 %v1437_v37, %v1408_v35 }
 0x189   :  { %v2196_v2 = vadd.f32 %v2177_v20, %v1982_v4  ;;  %v1983_v27 = vadd.f32 %v1965_v55, %v1704_v53  ;;  %v2154_v21 = vpop.f32.mrf.mxu1  ;;  %v1453_v9 = vadd.f32 %v1438_v58, %v4118_v62  ;;  %v1454_v62 = vadd.f32 %v1441_v50, %v4131_v16 }
 0x18a   :  { %v1455_v16 = vadd.f32 %v1443_v44, %v4139_v54  ;;  %v1456_v54 = vadd.f32 %v1446_v14, %v4143_v11  ;;  %v1457_v11 = vadd.f32 %v1448_v10, %v4146_v60 }
 0x18b   :  { %2204 = vst [vmem:[%s4230_s2] sm:$0xff] %v2196_v2  ;;  %v1706_v19 = vadd.f32 %v1691_v56, %v1453_v9  ;;  %v1707_v36 = vadd.f32 %v1694_v18, %v1454_v62 }
 0x18c   :  { %v1708_v45 = vadd.f32 %v1696_v30, %v1455_v16 }
 0x18d   :  { %v1969_v52 = vpop.f32.mrf.mxu2 }
 0x18e   :  { %v2178_v1 = vpop.f32.mrf.mxu3  ;;  %v1938_v48 = vpop.f32.mrf.mxu0 }
 0x18f   :  { %v2179_v39 = vadd.f32 %v2178_v1, %v2149_v26  ;;  %v1968_v51 = vadd.f32 %v1967_v6, %v1938_v48 }
 0x191   :  { %v2197_v38 = vadd.f32 %v2179_v39, %v1983_v27  ;;  %v1984_v28 = vadd.f32 %v1968_v51, %v1705_v3  ;;  %v2157_v0 = vpop.f32.mrf.mxu1  ;;  %v1709_v39 = vadd.f32 %v1699_v46, %v1456_v54  ;;  %v1710_v51 = vadd.f32 %v1701_v40, %v1457_v11 }
 0x193   :  { %2205 = vst [vmem:[%s4230_s2 + $0x8] sm:$0xff] %v2197_v38 }
 0x195   :  { %v1972_v13 = vpop.f32.mrf.mxu2 }
 0x196   :  { %v2181_v5 = vpop.f32.mrf.mxu3  ;;  %v1940_v33 = vpop.f32.mrf.mxu0 }
 0x197   :  { %v2182_v63 = vadd.f32 %v2181_v5, %v2152_v22  ;;  %v1970_v7 = vadd.f32 %v1969_v52, %v1940_v33 }
 0x199   :  { %v2198_v29 = vadd.f32 %v2182_v63, %v1984_v28  ;;  %v1985_v32 = vadd.f32 %v1970_v7, %v1706_v19  ;;  %v2159_v34 = vpop.f32.mrf.mxu1 }
 0x19b   :  { %2206 = vst [vmem:[%s4230_s2 + $0x10] sm:$0xff] %v2198_v29 }
 0x19d   :  { %v1974_v4 = vpop.f32.mrf.mxu2 }
 0x19e   :  { %v2183_v26 = vpop.f32.mrf.mxu3  ;;  %v1943_v35 = vpop.f32.mrf.mxu0 }
 0x19f   :  { %v2184_v37 = vadd.f32 %v2183_v26, %v2154_v21  ;;  %v1973_v47 = vadd.f32 %v1972_v13, %v1943_v35 }
 0x1a1   :  { %v2199_v8 = vadd.f32 %v2184_v37, %v1985_v32  ;;  %v1986_v42 = vadd.f32 %v1973_v47, %v1707_v36  ;;  %v2162_v27 = vpop.f32.mrf.mxu1 }
 0x1a3   :  { %2207 = vst [vmem:[%s4230_s2 + $0x18] sm:$0xff] %v2199_v8 }
 0x1a5   :  { %v1977_v1 = vpop.f32.mrf.mxu2 }
 0x1a6   :  { %v2186_v20 = vpop.f32.mrf.mxu3  ;;  %v1945_v6 = vpop.f32.mrf.mxu0 }
 0x1a7   :  { %v2187_v24 = vadd.f32 %v2186_v20, %v2157_v0  ;;  %v1975_v2 = vadd.f32 %v1974_v4, %v1945_v6 }
 0x1a9   :  { %v2200_v23 = vadd.f32 %v2187_v24, %v1986_v42  ;;  %v1987_v43 = vadd.f32 %v1975_v2, %v1708_v45  ;;  %v2164_v3 = vpop.f32.mrf.mxu1 }
 0x1ab   :  { %2208 = vst [vmem:[%s4230_s2 + $0x20] sm:$0xff] %v2200_v23 }
 0x1ad   :  { %v1979_v52 = vpop.f32.mrf.mxu2 }
 0x1ae   :  { %v2188_v55 = vpop.f32.mrf.mxu3  ;;  %v1948_v53 = vpop.f32.mrf.mxu0 }
 0x1af   :  { %v2189_v22 = vadd.f32 %v2188_v55, %v2159_v34  ;;  %v1978_v57 = vadd.f32 %v1977_v1, %v1948_v53 }
 0x1b1   :  { %v2201_v41 = vadd.f32 %v2189_v22, %v1987_v43  ;;  %v1988_v25 = vadd.f32 %v1978_v57, %v1709_v39 }
 0x1b3   :  { %2209 = vst [vmem:[%s4230_s2 + $0x28] sm:$0xff] %v2201_v41 }
 0x1b6   :  { %v2191_v48 = vpop.f32.mrf.mxu3  ;;  %v1950_v38 = vpop.f32.mrf.mxu0 }
 0x1b7   :  { %v2192_v31 = vadd.f32 %v2191_v48, %v2162_v27  ;;  %v1980_v17 = vadd.f32 %v1979_v52, %v1950_v38 }
 0x1b9   :  { %v2202_v12 = vadd.f32 %v2192_v31, %v1988_v25  ;;  %v1989_v5 = vadd.f32 %v1980_v17, %v1710_v51 }
 0x1bb   :  { %2210 = vst [vmem:[%s4230_s2 + $0x30] sm:$0xff] %v2202_v12 }
 0x1be   :  { %v2193_v21 = vpop.f32.mrf.mxu3 }
 0x1bf   :  { %v2194_v59 = vadd.f32 %v2193_v21, %v2164_v3 }
 0x1c1   :  { %v2203_v49 = vadd.f32 %v2194_v59, %v1989_v5 }
 0x1c3   :  { %2211 = vst [vmem:[%s4230_s2 + $0x38] sm:$0xff] %v2203_v49 }

</bundles_post_ra>
